<compile_context>
chip_gen: v5e
topology: v5e:2x2
jax: 0.10.0
libtpu: 0.0.40
codegen_flags: <defaults>
</compile_context>

<pallas_src>
import jax
import jax.numpy as jnp
from jax import lax
from jax.experimental import pallas as pl
from jax.experimental.pallas import tpu as pltpu

MATMUL_DTYPE = jnp.bfloat16  # MXU-native on v5e/v6e/v7x; accumulation stays f32.


def _make_downlayer_kernel(H, W, Cin, Cout):
    Hp, Wp = H // 2, W // 2

    def conv3x3_bn_relu(h, w_flat, sb):
        """h: (Hp, Wp, C) f32; w_flat: (9*C, Cout) bf16; sb: (2, Cout) f32."""
        C = h.shape[-1]
        # 1-pixel zero halo built from thin zero strips (no scratch, no full-buffer zeroing).
        zrow = jnp.zeros((1, Wp, C), h.dtype)
        zcol = jnp.zeros((Hp + 2, 1, C), h.dtype)
        hpad = jnp.concatenate([zrow, h, zrow], axis=0)        # (Hp+2, Wp,   C)
        hpad = jnp.concatenate([zcol, hpad, zcol], axis=1)     # (Hp+2, Wp+2, C)
        # im2col: 9 shifted taps concatenated along channels -> one fused matmul.
        taps = [hpad[dh:dh + Hp, dw:dw + Wp, :]
                for dh in range(3) for dw in range(3)]
        patches = jnp.concatenate(taps, axis=-1).reshape(Hp * Wp, 9 * C)
        acc = jnp.dot(patches.astype(w_flat.dtype), w_flat,
                      preferred_element_type=jnp.float32)      # (Hp*Wp, Cout) f32
        # folded (conv-bias + BN) affine, then ReLU — all f32.
        y = jnp.maximum(acc * sb[0:1, :] + sb[1:2, :], 0.0)
        return y.reshape(Hp, Wp, -1)

    def kernel(x_ref, w1_ref, sb1_ref, w2_ref, sb2_ref, o_ref):
        x = x_ref[...]                                          # (H, W, Cin) f32
        # ---------- MaxPool2d(2): reduce H first (free leading-dim reshape), then W ----------
        xh = jnp.max(x.reshape(Hp, 2, W, Cin), axis=1)          # (Hp, W, Cin)
        pooled = jnp.max(xh.reshape(Hp, Wp, 2, Cin), axis=2)    # (Hp, Wp, Cin)
        # ---------- Conv1 + BN + ReLU, Conv2 + BN + ReLU ----------
        y1 = conv3x3_bn_relu(pooled, w1_ref[...], sb1_ref[...])
        y2 = conv3x3_bn_relu(y1, w2_ref[...], sb2_ref[...])
        o_ref[...] = y2.astype(o_ref.dtype)

    return kernel


def down_layer_pallas(x_nhwc, w1_flat, sb1, w2_flat, sb2):
    """x_nhwc: (B, H, W, Cin) f32.
    w*_flat: (9*Cin, Cout) / (9*Cout, Cout) bf16 (HWIO reshaped host-side).
    sb*: (2, Cout) f32 stacked [scale, shift].
    Returns (B, H//2, W//2, Cout) f32."""
    B, H, W, Cin = x_nhwc.shape
    Cout = sb1.shape[1]
    assert H % 2 == 0 and W % 2 == 0
    assert w1_flat.shape == (9 * Cin, Cout)
    assert w2_flat.shape == (9 * Cout, Cout)
    Hp, Wp = H // 2, W // 2
    kernel = _make_downlayer_kernel(H, W, Cin, Cout)

    return pl.pallas_call(
        kernel,
        out_shape=jax.ShapeDtypeStruct((B, Hp, Wp, Cout), jnp.float32),
        grid=(B,),
        in_specs=[
            # batch dim squeezed out of the kernel view (block index b).
            pl.BlockSpec((None, H, W, Cin), lambda b: (b, 0, 0, 0)),
            pl.BlockSpec((9 * Cin, Cout), lambda b: (0, 0)),
            pl.BlockSpec((2, Cout), lambda b: (0, 0)),
            pl.BlockSpec((9 * Cout, Cout), lambda b: (0, 0)),
            pl.BlockSpec((2, Cout), lambda b: (0, 0)),
        ],
        out_specs=pl.BlockSpec((None, Hp, Wp, Cout), lambda b: (b, 0, 0, 0)),
        compiler_params=pltpu.CompilerParams(
            dimension_semantics=("parallel",),
            vmem_limit_bytes=64 * 1024 * 1024,
        ),
    )(x_nhwc, w1_flat, sb1, w2_flat, sb2)


def _reference_nchw(x, w1, b1, g1, be1, m1, v1, w2, b2, g2, be2, m2, v2,
                    eps=1e-5, conv_dtype=jnp.float32):
    """Pure-JAX NCHW reference matching the PyTorch module (eval-mode BN).
    conv_dtype lets us emulate bf16 conv operands (f32 accumulation)."""
    xp = lax.reduce_window(x, -jnp.inf, lax.max, (1, 1, 2, 2), (1, 1, 2, 2), "VALID")

    def conv(h, w, b):
        y = lax.conv_general_dilated(
            h.astype(conv_dtype), w.astype(conv_dtype), (1, 1), ((1, 1), (1, 1)),
            dimension_numbers=("NCHW", "OIHW", "NCHW"),
            preferred_element_type=jnp.float32)
        return y + b[None, :, None, None]

    def bn(h, g, be, m, v):
        return (g[None, :, None, None] * (h - m[None, :, None, None])
                / jnp.sqrt(v[None, :, None, None] + eps) + be[None, :, None, None])

    y = jnp.maximum(bn(conv(xp, w1, b1), g1, be1, m1, v1), 0.0)
    y = jnp.maximum(bn(conv(y, w2, b2), g2, be2, m2, v2), 0.0)
    return y


if __name__ == "__main__":
    B, Cin, H, W = 2, 4, 16, 16
    Cout = 8
    eps = 1e-5

    key = jax.random.PRNGKey(0)
    ks = jax.random.split(key, 13)

    # input in PyTorch NCHW layout
    x_nchw = jax.random.normal(ks[0], (B, Cin, H, W), jnp.float32)

    # deterministic parameters (PyTorch layouts: conv weight OIHW, per-channel BN)
    w1_oihw = 0.2 * jax.random.normal(ks[1], (Cout, Cin, 3, 3), jnp.float32)
    b1 = 0.1 * jax.random.normal(ks[2], (Cout,), jnp.float32)
    g1 = 1.0 + 0.1 * jax.random.normal(ks[3], (Cout,), jnp.float32)
    be1 = 0.1 * jax.random.normal(ks[4], (Cout,), jnp.float32)
    m1 = 0.1 * jax.random.normal(ks[5], (Cout,), jnp.float32)
    v1 = 1.0 + jax.nn.softplus(jax.random.normal(ks[6], (Cout,), jnp.float32))

    w2_oihw = 0.2 * jax.random.normal(ks[7], (Cout, Cout, 3, 3), jnp.float32)
    b2 = 0.1 * jax.random.normal(ks[8], (Cout,), jnp.float32)
    g2 = 1.0 + 0.1 * jax.random.normal(ks[9], (Cout,), jnp.float32)
    be2 = 0.1 * jax.random.normal(ks[10], (Cout,), jnp.float32)
    m2 = 0.1 * jax.random.normal(ks[11], (Cout,), jnp.float32)
    v2 = 1.0 + jax.nn.softplus(jax.random.normal(ks[12], (Cout,), jnp.float32))

    # ----- glue: layout conversion, im2col weight flattening, BN folding -----
    x_nhwc = jnp.transpose(x_nchw, (0, 2, 3, 1))                    # NCHW -> NHWC
    w1_hwio = jnp.transpose(w1_oihw, (2, 3, 1, 0))                  # OIHW -> HWIO
    w2_hwio = jnp.transpose(w2_oihw, (2, 3, 1, 0))
    # (3,3,C,Cout) -> (9*C, Cout), row index = dh*3*C + dw*C + c (matches im2col concat)
    w1_flat = w1_hwio.reshape(9 * Cin, Cout).astype(MATMUL_DTYPE)
    w2_flat = w2_hwio.reshape(9 * Cout, Cout).astype(MATMUL_DTYPE)

    scale1 = g1 / jnp.sqrt(v1 + eps)
    shift1 = (b1 - m1) * scale1 + be1
    scale2 = g2 / jnp.sqrt(v2 + eps)
    shift2 = (b2 - m2) * scale2 + be2
    sb1 = jnp.stack([scale1, shift1]).astype(jnp.float32)           # (2, Cout)
    sb2 = jnp.stack([scale2, shift2]).astype(jnp.float32)           # (2, Cout)

    out_nhwc = down_layer_pallas(x_nhwc, w1_flat, sb1, w2_flat, sb2)
    out_nchw = jnp.transpose(out_nhwc, (0, 3, 1, 2))                # NHWC -> NCHW
    jax.block_until_ready(out_nchw)
    assert out_nchw.shape == (B, Cout, H // 2, W // 2)

    # Tight check vs. a reference that uses the same bf16 conv operands / f32 accumulation.
    ref_bf16 = _reference_nchw(x_nchw, w1_oihw, b1, g1, be1, m1, v1,
                               w2_oihw, b2, g2, be2, m2, v2, eps,
                               conv_dtype=MATMUL_DTYPE)
    err_bf16 = float(jnp.max(jnp.abs(out_nchw - ref_bf16)))
    assert jnp.allclose(out_nchw, ref_bf16, atol=1e-2, rtol=1e-2), err_bf16

    # Loose check vs. the exact f32 module semantics (tolerance reflects bf16 operands).
    ref_f32 = _reference_nchw(x_nchw, w1_oihw, b1, g1, be1, m1, v1,
                              w2_oihw, b2, g2, be2, m2, v2, eps,
                              conv_dtype=jnp.float32)
    err_f32 = float(jnp.max(jnp.abs(out_nchw - ref_f32)))
    assert jnp.allclose(out_nchw, ref_f32, atol=1e-1, rtol=1e-1), err_f32

    print("KERNEL_OK")
</pallas_src>

<mosaic_0001>
module attributes {stable_mosaic.version = 11 : i64} {
  func.func @kernel(%arg0: i32, %arg1: memref<1x16x16x4xf32, #tpu.memory_space<vmem>>, %arg2: memref<36x8xbf16, #tpu.memory_space<vmem>>, %arg3: memref<2x8xf32, #tpu.memory_space<vmem>>, %arg4: memref<72x8xbf16, #tpu.memory_space<vmem>>, %arg5: memref<2x8xf32, #tpu.memory_space<vmem>>, %arg6: memref<1x8x8x8xf32, #tpu.memory_space<vmem>>) attributes {dimension_semantics = [#tpu.dimension_semantics<parallel>], iteration_bounds = array<i64: 2>, scalar_prefetch = 0 : i64, scratch_operands = 0 : i64, tpu.core_type = #tpu.core_type<tc>, window_params = [{transform_indices = @transform_0, window_bounds = array<i64: 1, 16, 16, 4>}, {pipeline_mode = #tpu.pipeline_mode<synchronous>, transform_indices = @transform_1, window_bounds = array<i64: 36, 8>}, {pipeline_mode = #tpu.pipeline_mode<synchronous>, transform_indices = @transform_2, window_bounds = array<i64: 2, 8>}, {pipeline_mode = #tpu.pipeline_mode<synchronous>, transform_indices = @transform_3, window_bounds = array<i64: 72, 8>}, {pipeline_mode = #tpu.pipeline_mode<synchronous>, transform_indices = @transform_4, window_bounds = array<i64: 2, 8>}, {transform_indices = @transform_5, window_bounds = array<i64: 1, 8, 8, 8>}]} {
    %c0 = arith.constant 0 : index
    %c0_0 = arith.constant 0 : index
    %c0_1 = arith.constant 0 : index
    %c0_2 = arith.constant 0 : index
    %0 = vector.load %arg1[%c0, %c0_0, %c0_1, %c0_2] : memref<1x16x16x4xf32, #tpu.memory_space<vmem>>, vector<1x16x16x4xf32>
    %1 = vector.shape_cast %0 : vector<1x16x16x4xf32> to vector<16x16x4xf32>
    %2 = vector.shape_cast %1 : vector<16x16x4xf32> to vector<8x2x16x4xf32>
    %cst = arith.constant dense<0xFF800000> : vector<8x16x4xf32>
    %3 = vector.multi_reduction <maximumf>, %2, %cst [1] : vector<8x2x16x4xf32> to vector<8x16x4xf32>
    %4 = vector.shape_cast %3 : vector<8x16x4xf32> to vector<8x8x2x4xf32>
    %cst_3 = arith.constant dense<0xFF800000> : vector<8x8x4xf32>
    %5 = vector.multi_reduction <maximumf>, %4, %cst_3 [2] : vector<8x8x2x4xf32> to vector<8x8x4xf32>
    %c0_4 = arith.constant 0 : index
    %c0_5 = arith.constant 0 : index
    %6 = vector.load %arg2[%c0_4, %c0_5] : memref<36x8xbf16, #tpu.memory_space<vmem>>, vector<36x8xbf16>
    %c0_6 = arith.constant 0 : index
    %c0_7 = arith.constant 0 : index
    %7 = vector.load %arg3[%c0_6, %c0_7] : memref<2x8xf32, #tpu.memory_space<vmem>>, vector<2x8xf32>
    %cst_8 = arith.constant 0.000000e+00 : f32
    %8 = vector.broadcast %cst_8 : f32 to vector<1x8x4xf32>
    %cst_9 = arith.constant 0.000000e+00 : f32
    %9 = vector.broadcast %cst_9 : f32 to vector<10x1x4xf32>
    %10 = tpu.concatenate %8, %5, %8 in 0 : vector<1x8x4xf32>, vector<8x8x4xf32>, vector<1x8x4xf32> -> vector<10x8x4xf32>
    %11 = tpu.concatenate %9, %10, %9 in 1 : vector<10x1x4xf32>, vector<10x8x4xf32>, vector<10x1x4xf32> -> vector<10x10x4xf32>
    %12 = vector.extract_strided_slice %11 {offsets = [0, 0, 0], sizes = [8, 8, 4], strides = [1, 1, 1]} : vector<10x10x4xf32> to vector<8x8x4xf32>
    %13 = vector.extract_strided_slice %11 {offsets = [0, 1, 0], sizes = [8, 8, 4], strides = [1, 1, 1]} : vector<10x10x4xf32> to vector<8x8x4xf32>
    %14 = vector.extract_strided_slice %11 {offsets = [0, 2, 0], sizes = [8, 8, 4], strides = [1, 1, 1]} : vector<10x10x4xf32> to vector<8x8x4xf32>
    %15 = vector.extract_strided_slice %11 {offsets = [1, 0, 0], sizes = [8, 8, 4], strides = [1, 1, 1]} : vector<10x10x4xf32> to vector<8x8x4xf32>
    %16 = vector.extract_strided_slice %11 {offsets = [1, 1, 0], sizes = [8, 8, 4], strides = [1, 1, 1]} : vector<10x10x4xf32> to vector<8x8x4xf32>
    %17 = vector.extract_strided_slice %11 {offsets = [1, 2, 0], sizes = [8, 8, 4], strides = [1, 1, 1]} : vector<10x10x4xf32> to vector<8x8x4xf32>
    %18 = vector.extract_strided_slice %11 {offsets = [2, 0, 0], sizes = [8, 8, 4], strides = [1, 1, 1]} : vector<10x10x4xf32> to vector<8x8x4xf32>
    %19 = vector.extract_strided_slice %11 {offsets = [2, 1, 0], sizes = [8, 8, 4], strides = [1, 1, 1]} : vector<10x10x4xf32> to vector<8x8x4xf32>
    %20 = vector.extract_strided_slice %11 {offsets = [2, 2, 0], sizes = [8, 8, 4], strides = [1, 1, 1]} : vector<10x10x4xf32> to vector<8x8x4xf32>
    %21 = tpu.concatenate %12, %13, %14, %15, %16, %17, %18, %19, %20 in 2 : vector<8x8x4xf32>, vector<8x8x4xf32>, vector<8x8x4xf32>, vector<8x8x4xf32>, vector<8x8x4xf32>, vector<8x8x4xf32>, vector<8x8x4xf32>, vector<8x8x4xf32>, vector<8x8x4xf32> -> vector<8x8x36xf32>
    %22 = vector.shape_cast %21 : vector<8x8x36xf32> to vector<64x36xf32>
    %23 = arith.truncf %22 : vector<64x36xf32> to vector<64x36xbf16>
    %cst_10 = arith.constant dense<0.000000e+00> : vector<64x8xf32>
    %24 = tpu.matmul %23, %6, %cst_10 {dimension_numbers = #tpu.dot_dimension_numbers<[1], [0], [0], [1], [0, 0, 1, 1], [], []>} : vector<64x36xbf16>, vector<36x8xbf16>, vector<64x8xf32> -> vector<64x8xf32>
    %25 = vector.extract_strided_slice %7 {offsets = [0, 0], sizes = [1, 8], strides = [1, 1]} : vector<2x8xf32> to vector<1x8xf32>
    %26 = vector.broadcast %25 : vector<1x8xf32> to vector<64x8xf32>
    %27 = arith.mulf %24, %26 : vector<64x8xf32>
    %28 = vector.extract_strided_slice %7 {offsets = [1, 0], sizes = [1, 8], strides = [1, 1]} : vector<2x8xf32> to vector<1x8xf32>
    %29 = vector.broadcast %28 : vector<1x8xf32> to vector<64x8xf32>
    %30 = arith.addf %27, %29 : vector<64x8xf32>
    %cst_11 = arith.constant 0.000000e+00 : f32
    %31 = vector.broadcast %cst_11 : f32 to vector<64x8xf32>
    %32 = arith.maximumf %30, %31 : vector<64x8xf32>
    %33 = vector.shape_cast %32 : vector<64x8xf32> to vector<8x8x8xf32>
    %c0_12 = arith.constant 0 : index
    %c0_13 = arith.constant 0 : index
    %34 = vector.load %arg4[%c0_12, %c0_13] : memref<72x8xbf16, #tpu.memory_space<vmem>>, vector<72x8xbf16>
    %c0_14 = arith.constant 0 : index
    %c0_15 = arith.constant 0 : index
    %35 = vector.load %arg5[%c0_14, %c0_15] : memref<2x8xf32, #tpu.memory_space<vmem>>, vector<2x8xf32>
    %cst_16 = arith.constant 0.000000e+00 : f32
    %36 = vector.broadcast %cst_16 : f32 to vector<1x8x8xf32>
    %cst_17 = arith.constant 0.000000e+00 : f32
    %37 = vector.broadcast %cst_17 : f32 to vector<10x1x8xf32>
    %38 = tpu.concatenate %36, %33, %36 in 0 : vector<1x8x8xf32>, vector<8x8x8xf32>, vector<1x8x8xf32> -> vector<10x8x8xf32>
    %39 = tpu.concatenate %37, %38, %37 in 1 : vector<10x1x8xf32>, vector<10x8x8xf32>, vector<10x1x8xf32> -> vector<10x10x8xf32>
    %40 = vector.extract_strided_slice %39 {offsets = [0, 0, 0], sizes = [8, 8, 8], strides = [1, 1, 1]} : vector<10x10x8xf32> to vector<8x8x8xf32>
    %41 = vector.extract_strided_slice %39 {offsets = [0, 1, 0], sizes = [8, 8, 8], strides = [1, 1, 1]} : vector<10x10x8xf32> to vector<8x8x8xf32>
    %42 = vector.extract_strided_slice %39 {offsets = [0, 2, 0], sizes = [8, 8, 8], strides = [1, 1, 1]} : vector<10x10x8xf32> to vector<8x8x8xf32>
    %43 = vector.extract_strided_slice %39 {offsets = [1, 0, 0], sizes = [8, 8, 8], strides = [1, 1, 1]} : vector<10x10x8xf32> to vector<8x8x8xf32>
    %44 = vector.extract_strided_slice %39 {offsets = [1, 1, 0], sizes = [8, 8, 8], strides = [1, 1, 1]} : vector<10x10x8xf32> to vector<8x8x8xf32>
    %45 = vector.extract_strided_slice %39 {offsets = [1, 2, 0], sizes = [8, 8, 8], strides = [1, 1, 1]} : vector<10x10x8xf32> to vector<8x8x8xf32>
    %46 = vector.extract_strided_slice %39 {offsets = [2, 0, 0], sizes = [8, 8, 8], strides = [1, 1, 1]} : vector<10x10x8xf32> to vector<8x8x8xf32>
    %47 = vector.extract_strided_slice %39 {offsets = [2, 1, 0], sizes = [8, 8, 8], strides = [1, 1, 1]} : vector<10x10x8xf32> to vector<8x8x8xf32>
    %48 = vector.extract_strided_slice %39 {offsets = [2, 2, 0], sizes = [8, 8, 8], strides = [1, 1, 1]} : vector<10x10x8xf32> to vector<8x8x8xf32>
    %49 = tpu.concatenate %40, %41, %42, %43, %44, %45, %46, %47, %48 in 2 : vector<8x8x8xf32>, vector<8x8x8xf32>, vector<8x8x8xf32>, vector<8x8x8xf32>, vector<8x8x8xf32>, vector<8x8x8xf32>, vector<8x8x8xf32>, vector<8x8x8xf32>, vector<8x8x8xf32> -> vector<8x8x72xf32>
    %50 = vector.shape_cast %49 : vector<8x8x72xf32> to vector<64x72xf32>
    %51 = arith.truncf %50 : vector<64x72xf32> to vector<64x72xbf16>
    %cst_18 = arith.constant dense<0.000000e+00> : vector<64x8xf32>
    %52 = tpu.matmul %51, %34, %cst_18 {dimension_numbers = #tpu.dot_dimension_numbers<[1], [0], [0], [1], [0, 0, 1, 1], [], []>} : vector<64x72xbf16>, vector<72x8xbf16>, vector<64x8xf32> -> vector<64x8xf32>
    %53 = vector.extract_strided_slice %35 {offsets = [0, 0], sizes = [1, 8], strides = [1, 1]} : vector<2x8xf32> to vector<1x8xf32>
    %54 = vector.broadcast %53 : vector<1x8xf32> to vector<64x8xf32>
    %55 = arith.mulf %52, %54 : vector<64x8xf32>
    %56 = vector.extract_strided_slice %35 {offsets = [1, 0], sizes = [1, 8], strides = [1, 1]} : vector<2x8xf32> to vector<1x8xf32>
    %57 = vector.broadcast %56 : vector<1x8xf32> to vector<64x8xf32>
    %58 = arith.addf %55, %57 : vector<64x8xf32>
    %cst_19 = arith.constant 0.000000e+00 : f32
    %59 = vector.broadcast %cst_19 : f32 to vector<64x8xf32>
    %60 = arith.maximumf %58, %59 : vector<64x8xf32>
    %61 = vector.shape_cast %60 : vector<64x8xf32> to vector<8x8x8xf32>
    %c0_20 = arith.constant 0 : index
    %c0_21 = arith.constant 0 : index
    %c0_22 = arith.constant 0 : index
    %c0_23 = arith.constant 0 : index
    %62 = vector.load %arg6[%c0_20, %c0_21, %c0_22, %c0_23] : memref<1x8x8x8xf32, #tpu.memory_space<vmem>>, vector<1x8x8x8xf32>
    %63 = vector.shape_cast %62 : vector<1x8x8x8xf32> to vector<8x8x8xf32>
    %64 = vector.shape_cast %61 : vector<8x8x8xf32> to vector<1x8x8x8xf32>
    tpu.vector_store %arg6[%c0_20, %c0_21, %c0_22, %c0_23], %64 {strides = array<i32>} : memref<1x8x8x8xf32, #tpu.memory_space<vmem>>, vector<1x8x8x8xf32>,
    return
  }
  func.func @transform_0(%arg0: i32) -> (i32, i32, i32, i32) {
    %c0_i32 = arith.constant 0 : i32
    %c0_i32_0 = arith.constant 0 : i32
    %c0_i32_1 = arith.constant 0 : i32
    %c0_i32_2 = arith.constant 0 : i32
    return %arg0, %c0_i32, %c0_i32_0, %c0_i32_1 : i32, i32, i32, i32
  }
  func.func @transform_1(%arg0: i32) -> (i32, i32) {
    %c0_i32 = arith.constant 0 : i32
    %c0_i32_0 = arith.constant 0 : i32
    %c0_i32_1 = arith.constant 0 : i32
    return %c0_i32, %c0_i32_0 : i32, i32
  }
  func.func @transform_2(%arg0: i32) -> (i32, i32) {
    %c0_i32 = arith.constant 0 : i32
    %c0_i32_0 = arith.constant 0 : i32
    %c0_i32_1 = arith.constant 0 : i32
    return %c0_i32, %c0_i32_0 : i32, i32
  }
  func.func @transform_3(%arg0: i32) -> (i32, i32) {
    %c0_i32 = arith.constant 0 : i32
    %c0_i32_0 = arith.constant 0 : i32
    %c0_i32_1 = arith.constant 0 : i32
    return %c0_i32, %c0_i32_0 : i32, i32
  }
  func.func @transform_4(%arg0: i32) -> (i32, i32) {
    %c0_i32 = arith.constant 0 : i32
    %c0_i32_0 = arith.constant 0 : i32
    %c0_i32_1 = arith.constant 0 : i32
    return %c0_i32, %c0_i32_0 : i32, i32
  }
  func.func @transform_5(%arg0: i32) -> (i32, i32, i32, i32) {
    %c0_i32 = arith.constant 0 : i32
    %c0_i32_0 = arith.constant 0 : i32
    %c0_i32_1 = arith.constant 0 : i32
    %c0_i32_2 = arith.constant 0 : i32
    return %arg0, %c0_i32, %c0_i32_0, %c0_i32_1 : i32, i32, i32, i32
  }
}

</mosaic_0001>

<bundles_post_ra>
// kernel: tpu_custom_call.1
= control target key start
LH: loop header
LB: loop body
LE: loop exit
PB: predicated region body
PF: predicated region fallthrough
CT: control target
= control target key end

     0   :  { %10 = vsyncpa [#allocation3], 0  ;;  %s3529_s0 = inlined_call_operand.vmem [shape: f32[2,16,16,4], index: 0, kind: input, shape index: {}]   ;;  %s3530_s1 = inlined_call_operand.vmem [shape: bf16[36,8], index: 1, kind: input, shape index: {}]   ;;  %s3531_s2 = inlined_call_operand.vmem [shape: f32[2,8], index: 2, kind: input, shape index: {}]   ;;  %s3532_s3 = inlined_call_operand.vmem [shape: bf16[72,8], index: 3, kind: input, shape index: {}]   ;;  %s3533_s4 = inlined_call_operand.vmem [shape: f32[2,8], index: 4, kind: input, shape index: {}]   ;;  %s3534_s5 = inlined_call_operand.hbm [shape: f32[2,8,8,8], index: 5, kind: output, shape index: {}]  }
   0x1   :  { %12 = vsyncpa [#allocation3 + $0x1], 0  ;;  %s2569_s18 = smov 0   ;;  %s2571_s19 = smov 0  }
   0x2   :  { %s2573_s20 = smov 0   ;;  %s2575_s21 = smov 0  }
   0x3 LB: > { %s2590_s22 = sadd.s32 4294967295, %s2523_s21   ;;  %s2028_s23 = sadd.s32 4294967294, %s2523_s21   ;;  %s2523_s21 = sphi %s2575_s21, %s3540_s21   ;;  %s2519_s20 = sphi %s2573_s20, %s3539_s20   ;;  %s2515_s19 = sphi %s2571_s19, %s3538_s19   ;;  %s2511_s18 = sphi %s2569_s18, %s3537_s18  }
   0x4   : > { %s2594_s24 = sadd.s32 1, %s2523_s21   ;;  %s135_s25 = sadd.s32 1, %s2519_s20 }
   0x5   : > { %s132_s26 = ssub.s32 %s2523_s21, %s2594_s24  ;;  %p145_p0 = scmp.ne.s32.totalorder %s2519_s20, %s2515_s19 }
   0x6   : > { %p133_p1 = scmp.eq.s32.totalorder %s132_s26, 0  ;;  %p146_p2 = scmp.eq.s32.totalorder %s2590_s22, 1 }
   0x7   : > { %p151_p3 = scmp.ne.s32.totalorder %s2515_s19, %s2511_s18  ;;  %p152_p4 = scmp.eq.s32.totalorder %s2028_s23, 1 }
   0x8   : > { %s2605_s27 = scalar_select %p133_p1, %s2519_s20, %s135_s25  }
   0x9   : > { %p2607_p5 = por %p146_p2, %p145_p0  ;;  %p2611_p6 = por %p152_p4, %p151_p3 }
   0xa   : > { %p2031_p7 = scmp.ge.s32.totalorder %s2523_s21, 1  ;;  %p190_p8 = scmp.lt.s32.totalorder %s2523_s21, 3 }
   0xc   : > { %p191_p9 = pnand %p2031_p7, %p190_p8 }
   0xd   : > { %p218_p10 = scmp.lt.s32.totalorder (!%p191_p9), %s2590_s22, 1  ;;  %s2525_s10 = smov (!%p191_p9), 12  }
   0xe   : > { %194 = sbr.rel (%p191_p9) target bundleno = 842 (0x34a), region = 40  ;;  %s2526_s11 = smov (!%p191_p9), 4  }
   0xf   : > { %s2527_s12 = smov (!%p191_p9), 8   ;;  %s2528_s13 = smov (!%p191_p9), 28  }
  0x10   : > { %s2529_s14 = smov (!%p191_p9), 24   ;;  %s2531_s15 = smov (!%p191_p9), 20  }
  0x11   : > { %s2532_s16 = smov (!%p191_p9), 16   ;;  %s2533_s17 = smov (!%p191_p9), 32  }
  0x13   : > { %s219_s30 = scalar_select %p218_p10, %s2590_s22, 1  ;;  %vm256_vm0 = vcmask 31744   ;;  %vm417_vm1 = vcmask 25600   ;;  %vm936_vm2 = vcmask 1041409   ;;  %vm938_vm3 = vcmask 1042434  }
  0x14   : > { %vm940_vm4 = vcmask 1043459   ;;  %vm942_vm5 = vcmask 1044484   ;;  %vm944_vm6 = vcmask 1045509   ;;  %vm946_vm7 = vcmask 1046534  }
  0x15   : > { %s2072_s6 = sshll.u32 %s219_s30, 8  ;;  %vm948_vm8 = vcmask 1047559   ;;  %vm1018_vm9 = vcmask 1040384   ;;  %vm1053_vm10 = vcmask 1046528   ;;  %vm1102_vm11 = vcmask 1045504  }
  0x16   : > { %s2622_s9 = scalar_lea.vmem %s3529_s0, %s2072_s6  ;;  %vm1406_vm12 = vcmask 1041408   ;;  %vm1311_vm13 = vcmask 64512   ;;  %vm1320_vm14 = vcmask 97280   ;;  %vm1329_vm15 = vcmask 130048  }
  0x17   : > { %v232_v0 = vld [vmem:[%s2622_s9 + $0x40] sm:$0xff]  ;;  %v233_v1 = vld [vmem:[%s2622_s9 + $0x48] sm:$0xff]  ;;  %v234_v2 = vld [vmem:[%s2622_s9 + $0x50] sm:$0xff] }
  0x18   : > { %v235_v3 = vld [vmem:[%s2622_s9 + $0x58] sm:$0xff]  ;;  %v236_v4 = vld [vmem:[%s2622_s9 + $0x60] sm:$0xff]  ;;  %v237_v5 = vld [vmem:[%s2622_s9 + $0x68] sm:$0xff]  ;;  %v269_v6 = vsel %vm256_vm0, %v232_v0, -inf  ;;  %v270_v7 = vsel %vm256_vm0, %v234_v2, -inf  ;;  %v272_v8 = vsel %vm256_vm0, %v233_v1, -inf }
  0x19   : > { %v238_v9 = vld [vmem:[%s2622_s9 + $0x70] sm:$0xff]  ;;  %v239_v10 = vld [vmem:[%s2622_s9 + $0x78] sm:$0xff]  ;;  %v271_v11 = vmax.f32 %v269_v6, %v270_v7  ;;  %v273_v12 = vsel %vm256_vm0, %v235_v3, -inf  ;;  %v275_v13 = vsel %vm256_vm0, %v236_v4, -inf  ;;  %v278_v14 = vsel %vm256_vm0, %v237_v5, -inf }
  0x1a   : > { %v274_v15 = vmax.f32 %v272_v8, %v273_v12  ;;  %v276_v16 = vsel %vm256_vm0, %v238_v9, -inf  ;;  %v279_v17 = vsel %vm256_vm0, %v239_v10, -inf }
  0x1b   : > { %v2640_v18 = vmax.f32 %v275_v13, %v276_v16  ;;  %v2642_v19 = vmax.f32 %v278_v14, %v279_v17  ;;  %v333_v20 = vrot.slane %v271_v11, 2  ;;  %v334_v21 = vrot.slane %v271_v11, 4 }
  0x1c   : > { %v335_v22 = vrot.slane %v271_v11, 6  ;;  %v336_v23 = vrot.slane %v274_v15, 2  ;;  %v337_v24 = vrot.slane %v274_v15, 4  ;;  %v338_v25 = vrot.slane %v274_v15, 6 }
  0x1d   : > { %v339_v26 = vrot.slane %v2640_v18, 2  ;;  %v340_v27 = vrot.slane %v2640_v18, 4  ;;  %v341_v28 = vrot.slane %v2640_v18, 6  ;;  %v342_v29 = vrot.slane %v2642_v19, 2 }
  0x1e   : > { %v343_v30 = vrot.slane %v2642_v19, 4  ;;  %v530_v31 = vsel %vm417_vm1, %v271_v11, -inf  ;;  %v537_v32 = vsel %vm417_vm1, %v333_v20, -inf  ;;  %v544_v35 = vsel %vm417_vm1, %v334_v21, -inf }
  0x1f   : > { %v531_v33 = vrot.slane %v530_v31, 4  ;;  %v538_v34 = vrot.slane %v537_v32, 4  ;;  %v551_v36 = vsel %vm417_vm1, %v335_v22, -inf  ;;  %v545_v37 = vrot.slane %v544_v35, 4 }
  0x20   : > { %v552_v38 = vrot.slane %v551_v36, 4  ;;  %v558_v39 = vsel %vm417_vm1, %v274_v15, -inf  ;;  %v565_v40 = vsel %vm417_vm1, %v336_v23, -inf  ;;  %v572_v47 = vsel %vm417_vm1, %v337_v24, -inf }
  0x21   : > { %v532_v41 = vmax.f32 %v530_v31, %v531_v33  ;;  %v539_v42 = vmax.f32 %v537_v32, %v538_v34  ;;  %v559_v43 = vrot.slane %v558_v39, 4  ;;  %v566_v44 = vrot.slane %v565_v40, 4 }
  0x22   : > { %v546_v45 = vmax.f32 %v544_v35, %v545_v37  ;;  %v553_v46 = vmax.f32 %v551_v36, %v552_v38  ;;  %v579_v48 = vsel %vm417_vm1, %v338_v25, -inf  ;;  %v573_v55 = vrot.slane %v572_v47, 4 }
  0x23   : > { %v533_v49 = vrot.slane %v532_v41, 2  ;;  %v540_v50 = vrot.slane %v539_v42, 2  ;;  %v560_v51 = vmax.f32 %v558_v39, %v559_v43  ;;  %v567_v52 = vmax.f32 %v565_v40, %v566_v44 }
  0x24   : > { %v547_v53 = vrot.slane %v546_v45, 2  ;;  %v554_v54 = vrot.slane %v553_v46, 2  ;;  %v580_v56 = vrot.slane %v579_v48, 4  ;;  %v574_v63 = vmax.f32 %v572_v47, %v573_v55 }
  0x25   : > { %v534_v57 = vmax.f32 %v532_v41, %v533_v49  ;;  %v541_v58 = vmax.f32 %v539_v42, %v540_v50  ;;  %v561_v59 = vrot.slane %v560_v51, 2  ;;  %v568_v60 = vrot.slane %v567_v52, 2 }
  0x26   : > { %v548_v61 = vmax.f32 %v546_v45, %v547_v53  ;;  %v555_v62 = vmax.f32 %v553_v46, %v554_v54  ;;  %v581_v0 = vmax.f32 %v579_v48, %v580_v56  ;;  %v575_v7 = vrot.slane %v574_v63, 2 }
  0x27   : > { %v535_v1 = vrot.slane %v534_v57, 1  ;;  %v542_v2 = vrot.slane %v541_v58, 1  ;;  %v562_v3 = vmax.f32 %v560_v51, %v561_v59  ;;  %v569_v4 = vmax.f32 %v567_v52, %v568_v60 }
  0x28   : > { %v549_v5 = vrot.slane %v548_v61, 1  ;;  %v556_v6 = vrot.slane %v555_v62, 1  ;;  %v582_v8 = vrot.slane %v581_v0, 2  ;;  %v344_v9 = vrot.slane %v2642_v19, 6 }
  0x29   : > { %v2658_v10 = vmax.f32 %v534_v57, %v535_v1  ;;  %v563_v11 = vrot.slane %v562_v3, 1  ;;  %v570_v12 = vrot.slane %v569_v4, 1  ;;  %v2660_v13 = vmax.f32 %v541_v58, %v542_v2 }
  0x2a   : > { %v2662_v14 = vmax.f32 %v548_v61, %v549_v5  ;;  %v576_v15 = vmax.f32 %v574_v63, %v575_v7  ;;  %v583_v16 = vmax.f32 %v581_v0, %v582_v8  ;;  %v2664_v17 = vmax.f32 %v555_v62, %v556_v6 }
  0x2b   : > { %v2666_v20 = vmax.f32 %v562_v3, %v563_v11  ;;  %v586_v21 = vsel %vm417_vm1, %v2640_v18, -inf  ;;  %v593_v22 = vsel %vm417_vm1, %v339_v26, -inf  ;;  %v2671_v23 = vmax.f32 %v569_v4, %v570_v12 }
  0x2c   : > { %v577_v24 = vrot.slane %v576_v15, 1  ;;  %v587_v25 = vrot.slane %v586_v21, 4  ;;  %v594_v31 = vrot.slane %v593_v22, 4  ;;  %v600_v32 = vsel %vm417_vm1, %v340_v27, -inf }
  0x2d   : > { %v607_v33 = vsel %vm417_vm1, %v341_v28, -inf  ;;  %v614_v34 = vsel %vm417_vm1, %v2642_v19, -inf  ;;  %v621_v35 = vsel %vm417_vm1, %v342_v29, -inf  ;;  %v584_v18 = vrot.slane %v583_v16, 1 }
  0x2e   : > { %v2680_v36 = vmax.f32 %v576_v15, %v577_v24  ;;  %v588_v26 = vmax.f32 %v586_v21, %v587_v25  ;;  %v595_v37 = vmax.f32 %v593_v22, %v594_v31  ;;  %v601_v38 = vrot.slane %v600_v32, 4  ;;  %v228_v22 = vld [vmem:[%s2622_s9 + $0x20] sm:$0xff]  ;;  %v229_v25 = vld [vmem:[%s2622_s9 + $0x28] sm:$0xff]  ;;  %v230_v31 = vld [vmem:[%s2622_s9 + $0x30] sm:$0xff] }
  0x2f   : > { %v608_v39 = vrot.slane %v607_v33, 4  ;;  %v615_v40 = vrot.slane %v614_v34, 4  ;;  %v622_v41 = vrot.slane %v621_v35, 4  ;;  %v628_v28 = vsel %vm417_vm1, %v343_v30, -inf }
  0x30   : > { %v589_v42 = vrot.slane %v588_v26, 2  ;;  %v596_v27 = vrot.slane %v595_v37, 2  ;;  %v635_v43 = vsel %vm417_vm1, %v344_v9, -inf  ;;  %v602_v44 = vmax.f32 %v600_v32, %v601_v38 }
  0x31   : > { %v609_v29 = vmax.f32 %v607_v33, %v608_v39  ;;  %v616_v45 = vmax.f32 %v614_v34, %v615_v40  ;;  %v623_v46 = vmax.f32 %v621_v35, %v622_v41  ;;  %v629_v49 = vrot.slane %v628_v28, 4  ;;  %v231_v35 = vld [vmem:[%s2622_s9 + $0x38] sm:$0xff] }
  0x32   : > { %v590_v47 = vmax.f32 %v588_v26, %v589_v42  ;;  %v597_v48 = vmax.f32 %v595_v37, %v596_v27  ;;  %v636_v50 = vrot.slane %v635_v43, 4  ;;  %v603_v51 = vrot.slane %v602_v44, 2 }
  0x33   : > { %v610_v52 = vrot.slane %v609_v29, 2  ;;  %v617_v53 = vrot.slane %v616_v45, 2  ;;  %v624_v54 = vrot.slane %v623_v46, 2  ;;  %v630_v19 = vmax.f32 %v628_v28, %v629_v49 }
  0x34   : > { %v591_v55 = vrot.slane %v590_v47, 1  ;;  %v598_v56 = vrot.slane %v597_v48, 1  ;;  %v637_v57 = vmax.f32 %v635_v43, %v636_v50  ;;  %v604_v30 = vmax.f32 %v602_v44, %v603_v51 }
  0x35   : > { %v611_v58 = vmax.f32 %v609_v29, %v610_v52  ;;  %v618_v59 = vmax.f32 %v616_v45, %v617_v53  ;;  %v625_v60 = vmax.f32 %v623_v46, %v624_v54  ;;  %v631_v63 = vrot.slane %v630_v19, 2 }
  0x36   : > { %v592_v61 = vmax.f32 %v590_v47, %v591_v55  ;;  %v599_v62 = vmax.f32 %v597_v48, %v598_v56  ;;  %v638_v0 = vrot.slane %v637_v57, 2  ;;  %v605_v1 = vrot.slane %v604_v30, 1 }
  0x37   : > { %v612_v2 = vrot.slane %v611_v58, 1  ;;  %v619_v3 = vrot.slane %v618_v59, 1  ;;  %v626_v4 = vrot.slane %v625_v60, 1  ;;  %v585_v5 = vmax.f32 %v583_v16, %v584_v18 }
  0x38   : > { %v632_v6 = vmax.f32 %v630_v19, %v631_v63  ;;  %v639_v7 = vmax.f32 %v637_v57, %v638_v0  ;;  %v606_v8 = vmax.f32 %v604_v30, %v605_v1  ;;  %v957_v16 = vsel %vm936_vm2, %v2660_v13, %v2658_v10 }
  0x39   : > { %v613_v9 = vmax.f32 %v611_v58, %v612_v2  ;;  %v620_v11 = vmax.f32 %v618_v59, %v619_v3  ;;  %v627_v12 = vmax.f32 %v625_v60, %v626_v4  ;;  %v964_v24 = vsel %vm936_vm2, %v599_v62, %v592_v61 }
  0x3a   : > { %v633_v15 = vrot.slane %v632_v6, 1  ;;  %v640_v21 = vrot.slane %v639_v7, 1  ;;  %v958_v33 = vsel %vm938_vm3, %v2662_v14, %v957_v16  ;;  %v965_v34 = vsel %vm938_vm3, %v606_v8, %v964_v24 }
  0x3b   : > { %v959_v26 = vsel %vm940_vm4, %v2664_v17, %v958_v33  ;;  %v966_v37 = vsel %vm940_vm4, %v613_v9, %v965_v34  ;;  %v263_v10 = vsel %vm256_vm0, %v228_v22, -inf  ;;  %v264_v39 = vsel %vm256_vm0, %v230_v31, -inf }
  0x3c   : > { %v634_v32 = vmax.f32 %v632_v6, %v633_v15  ;;  %v641_v18 = vmax.f32 %v639_v7, %v640_v21  ;;  %v960_v13 = vsel %vm942_vm5, %v2666_v20, %v959_v26  ;;  %v967_v38 = vsel %vm942_vm5, %v620_v11, %v966_v37 }
  0x3d   : > { %v266_v14 = vsel %vm256_vm0, %v229_v25, -inf  ;;  %v961_v40 = vsel %vm944_vm6, %v2671_v23, %v960_v13  ;;  %v968_v41 = vsel %vm944_vm6, %v627_v12, %v967_v38  ;;  %v265_v42 = vmax.f32 %v263_v10, %v264_v39 }
  0x3e   : > { %v267_v17 = vsel %vm256_vm0, %v231_v35, -inf  ;;  %v962_v27 = vsel %vm946_vm7, %v2680_v36, %v961_v40  ;;  %v969_v28 = vsel %vm946_vm7, %v634_v32, %v968_v41 }
  0x3f   : > { %v268_v20 = vmax.f32 %v266_v14, %v267_v17  ;;  %v2714_v43 = vsel %vm948_vm8, %v585_v5, %v962_v27  ;;  %v2717_v44 = vsel %vm948_vm8, %v641_v18, %v969_v28  ;;  %v327_v29 = vrot.slane %v265_v42, 2 }
  0x40   : > { %v328_v23 = vrot.slane %v265_v42, 4  ;;  %v1003_v45 = vrot.slane %v2714_v43, 7  ;;  %v1004_v46 = vrot.slane %v2717_v44, 7  ;;  %v329_v47 = vrot.slane %v265_v42, 6 }
  0x41   : > { %v330_v48 = vrot.slane %v268_v20, 2  ;;  %v331_v49 = vrot.slane %v268_v20, 4  ;;  %v332_v36 = vrot.slane %v268_v20, 6  ;;  %v474_v50 = vsel %vm417_vm1, %v265_v42, -inf }
  0x42   : > { %v481_v51 = vsel %vm417_vm1, %v327_v29, -inf  ;;  %v2726_v52 = vsel %vm1018_vm9, 0.0, %v1003_v45  ;;  %v2731_v53 = vsel %vm1018_vm9, 0.0, %v1004_v46  ;;  %v475_v54 = vrot.slane %v474_v50, 4 }
  0x43   : > { %v482_v55 = vrot.slane %v481_v51, 4  ;;  %v2141_v56 = vpack.i.bf16 %v2731_v53, %v2726_v52  ;;  %v488_v19 = vsel %vm417_vm1, %v328_v23, -inf  ;;  %v495_v57 = vsel %vm417_vm1, %v329_v47, -inf }
  0x44   : > { %v502_v30 = vsel %vm417_vm1, %v268_v20, -inf  ;;  %v476_v58 = vmax.f32 %v474_v50, %v475_v54  ;;  %v489_v60 = vrot.slane %v488_v19, 4  ;;  %v496_v61 = vrot.slane %v495_v57, 4 }
  0x45   : > { %v483_v59 = vmax.f32 %v481_v51, %v482_v55  ;;  %2142 = vrot.lane.b32.xlu1 %v2141_v56, %s2525_s10  ;;  %v503_v62 = vrot.slane %v502_v30, 4  ;;  %v509_v63 = vsel %vm417_vm1, %v330_v48, -inf  ;;  %v516_v0 = vsel %vm417_vm1, %v331_v49, -inf  ;;  %v240_v49 = vld [vmem:[%s2622_s9 + $0x80] sm:$0xff]  ;;  %v243_v55 = vld [vmem:[%s2622_s9 + $0x98] sm:$0xff] }
  0x46   : > { %v523_v1 = vsel %vm417_vm1, %v332_v36, -inf  ;;  %v477_v2 = vrot.slane %v476_v58, 2  ;;  %v490_v4 = vmax.f32 %v488_v19, %v489_v60  ;;  %v497_v5 = vmax.f32 %v495_v57, %v496_v61  ;;  %v242_v36 = vld [vmem:[%s2622_s9 + $0x90] sm:$0xff] }
  0x47   : > { %v484_v3 = vrot.slane %v483_v59, 2  ;;  %v504_v6 = vmax.f32 %v502_v30, %v503_v62  ;;  %v510_v7 = vrot.slane %v509_v63, 4  ;;  %v517_v8 = vrot.slane %v516_v0, 4  ;;  %v245_v62 = vld [vmem:[%s2622_s9 + $0xa8] sm:$0xff] }
  0x48   : > { %v524_v9 = vrot.slane %v523_v1, 4  ;;  %v478_v11 = vmax.f32 %v476_v58, %v477_v2  ;;  %v491_v15 = vrot.slane %v490_v4, 2  ;;  %v498_v21 = vrot.slane %v497_v5, 2  ;;  %v244_v58 = vld [vmem:[%s2622_s9 + $0xa0] sm:$0xff] }
  0x49   : > { %v485_v12 = vmax.f32 %v483_v59, %v484_v3  ;;  %v505_v22 = vrot.slane %v504_v6, 2  ;;  %v511_v16 = vmax.f32 %v509_v63, %v510_v7  ;;  %v518_v24 = vmax.f32 %v516_v0, %v517_v8  ;;  %v246_v59 = vld [vmem:[%s2622_s9 + $0xb0] sm:$0xff]  ;;  %v247_v63 = vld [vmem:[%s2622_s9 + $0xb8] sm:$0xff] }
  0x4a   : > { %v525_v25 = vmax.f32 %v523_v1, %v524_v9  ;;  %v479_v31 = vrot.slane %v478_v11, 1  ;;  %v492_v33 = vmax.f32 %v490_v4, %v491_v15  ;;  %v499_v34 = vmax.f32 %v497_v5, %v498_v21 }
  0x4b   : > { %v486_v32 = vrot.slane %v485_v12, 1  ;;  %v506_v35 = vmax.f32 %v504_v6, %v505_v22  ;;  %v512_v18 = vrot.slane %v511_v16, 2  ;;  %v519_v26 = vrot.slane %v518_v24, 2 }
  0x4c   : > { %v526_v37 = vrot.slane %v525_v25, 2  ;;  %v480_v10 = vmax.f32 %v478_v11, %v479_v31  ;;  %v493_v38 = vrot.slane %v492_v33, 1  ;;  %v500_v39 = vrot.slane %v499_v34, 1 }
  0x4d   : > { %v487_v13 = vmax.f32 %v485_v12, %v486_v32  ;;  %v507_v14 = vrot.slane %v506_v35, 1  ;;  %v513_v40 = vmax.f32 %v511_v16, %v512_v18  ;;  %v520_v41 = vmax.f32 %v518_v24, %v519_v26 }
  0x4e   : > { %v527_v42 = vmax.f32 %v525_v25, %v526_v37  ;;  %v494_v17 = vmax.f32 %v492_v33, %v493_v38  ;;  %v501_v27 = vmax.f32 %v499_v34, %v500_v39  ;;  %v2746_v20 = vsel %vm1018_vm9, %v1003_v45, 0.0  ;;  %v241_v45 = vld [vmem:[%s2622_s9 + $0x88] sm:$0xff] }
  0x4f   : > { %v950_v28 = vsel %vm936_vm2, %v487_v13, %v480_v10  ;;  %v508_v29 = vmax.f32 %v506_v35, %v507_v14  ;;  %v514_v23 = vrot.slane %v513_v40, 1  ;;  %v521_v47 = vrot.slane %v520_v41, 1 }
  0x50   : > { %v528_v48 = vrot.slane %v527_v42, 1  ;;  %v951_v50 = vsel %vm938_vm3, %v494_v17, %v950_v28  ;;  %v1063_v51 = vrot.slane %v2726_v52, 1  ;;  %v1064_v54 = vrot.slane %v2746_v20, 1 }
  0x51   : > { %v1113_v43 = vrot.slane %v2746_v20, 2  ;;  %v515_v56 = vmax.f32 %v513_v40, %v514_v23  ;;  %v522_v19 = vmax.f32 %v520_v41, %v521_v47  ;;  %v952_v30 = vsel %vm940_vm4, %v501_v27, %v951_v50 }
  0x52   : > { %v529_v57 = vmax.f32 %v527_v42, %v528_v48  ;;  %v953_v60 = vsel %vm942_vm5, %v508_v29, %v952_v30  ;;  %v2761_v61 = vsel %vm1053_vm10, %v1063_v51, %v1064_v54  ;;  %v281_v0 = vsel %vm256_vm0, %v240_v49, -inf }
  0x53   : > { %v282_v1 = vsel %vm256_vm0, %v242_v36, -inf  ;;  %v954_v2 = vsel %vm944_vm6, %v515_v56, %v953_v60  ;;  %v284_v4 = vsel %vm256_vm0, %v241_v45, -inf  ;;  %v285_v5 = vsel %vm256_vm0, %v243_v55, -inf }
  0x54   : > { %v283_v3 = vmax.f32 %v281_v0, %v282_v1  ;;  %v955_v6 = vsel %vm946_vm7, %v522_v19, %v954_v2  ;;  %v286_v7 = vmax.f32 %v284_v4, %v285_v5  ;;  %v287_v8 = vsel %vm256_vm0, %v244_v58, -inf }
  0x55   : > { %v288_v9 = vsel %vm256_vm0, %v246_v59, -inf  ;;  %v956_v11 = vsel %vm948_vm8, %v529_v57, %v955_v6  ;;  %v290_v15 = vsel %vm256_vm0, %v245_v62, -inf  ;;  %v291_v21 = vsel %vm256_vm0, %v247_v63, -inf }
  0x56   : > { %v2774_v12 = vmax.f32 %v287_v8, %v288_v9  ;;  %v1002_v22 = vrot.slane %v956_v11, 7  ;;  %v2778_v16 = vmax.f32 %v290_v15, %v291_v21  ;;  %v345_v24 = vrot.slane %v283_v3, 2 }
  0x57   : > { %v346_v25 = vrot.slane %v283_v3, 4  ;;  %v347_v31 = vrot.slane %v283_v3, 6  ;;  %v348_v32 = vrot.slane %v286_v7, 2  ;;  %v349_v33 = vrot.slane %v286_v7, 4 }
  0x58   : > { %v350_v34 = vrot.slane %v286_v7, 6  ;;  %v2781_v35 = vsel %vm1018_vm9, 0.0, %v1002_v22  ;;  %v2784_v18 = vsel %vm1018_vm9, %v1002_v22, 0.0  ;;  %v351_v26 = vrot.slane %v2774_v12, 2 }
  0x59   : > { %v352_v37 = vrot.slane %v2774_v12, 4  ;;  %v1060_v10 = vrot.slane %v2781_v35, 1  ;;  %v1061_v13 = vrot.slane %v2784_v18, 1  ;;  %v1110_v38 = vrot.slane %v2784_v18, 2 }
  0x5a   : > { %v353_v39 = vrot.slane %v2774_v12, 6  ;;  %v354_v14 = vrot.slane %v2778_v16, 2  ;;  %v355_v40 = vrot.slane %v2778_v16, 4  ;;  %v356_v41 = vrot.slane %v2778_v16, 6 }
  0x5b   : > { %v642_v42 = vsel %vm417_vm1, %v283_v3, -inf  ;;  %v2797_v17 = vsel %vm1053_vm10, %v1060_v10, %v1061_v13  ;;  %v649_v28 = vsel %vm417_vm1, %v345_v24, -inf  ;;  %v656_v29 = vsel %vm417_vm1, %v346_v25, -inf }
  0x5c   : > { %v643_v27 = vrot.slane %v642_v42, 4  ;;  %v2803_v23 = vpack.i.bf16 %v2761_v61, %v2797_v17  ;;  %v650_v47 = vrot.slane %v649_v28, 4  ;;  %v657_v48 = vrot.slane %v656_v29, 4 }
  0x5d   : > { %v663_v49 = vsel %vm417_vm1, %v347_v31, -inf  ;;  %v670_v51 = vsel %vm417_vm1, %v286_v7, -inf  ;;  %v677_v54 = vsel %vm417_vm1, %v348_v32, -inf  ;;  %v684_v58 = vsel %vm417_vm1, %v349_v33, -inf }
  0x5e   : > { %v644_v36 = vmax.f32 %v642_v42, %v643_v27  ;;  %v664_v50 = vrot.slane %v663_v49, 4  ;;  %2162 = vrot.lane.b32.xlu0 %v2803_v23, %s2526_s11  ;;  %v651_v45 = vmax.f32 %v649_v28, %v650_v47  ;;  %v658_v55 = vmax.f32 %v656_v29, %v657_v48 }
  0x5f   : > { %v671_v56 = vrot.slane %v670_v51, 4  ;;  %v678_v19 = vrot.slane %v677_v54, 4  ;;  %v691_v59 = vsel %vm417_vm1, %v350_v34, -inf  ;;  %v685_v3 = vrot.slane %v684_v58, 4 }
  0x60   : > { %v645_v57 = vrot.slane %v644_v36, 2  ;;  %v665_v30 = vmax.f32 %v663_v49, %v664_v50  ;;  %v652_v60 = vrot.slane %v651_v45, 2  ;;  %v659_v62 = vrot.slane %v658_v55, 2 }
  0x61   : > { %v672_v63 = vmax.f32 %v670_v51, %v671_v56  ;;  %v679_v0 = vmax.f32 %v677_v54, %v678_v19  ;;  %v692_v4 = vrot.slane %v691_v59, 4  ;;  %v686_v15 = vmax.f32 %v684_v58, %v685_v3 }
  0x62   : > { %v646_v1 = vmax.f32 %v644_v36, %v645_v57  ;;  %v666_v2 = vrot.slane %v665_v30, 2  ;;  %v653_v5 = vmax.f32 %v651_v45, %v652_v60  ;;  %v660_v6 = vmax.f32 %v658_v55, %v659_v62 }
  0x63   : > { %v673_v7 = vrot.slane %v672_v63, 2  ;;  %v680_v8 = vrot.slane %v679_v0, 2  ;;  %v693_v21 = vmax.f32 %v691_v59, %v692_v4  ;;  %v687_v34 = vrot.slane %v686_v15, 2 }
  0x64   : > { %v647_v9 = vrot.slane %v646_v1, 1  ;;  %v667_v11 = vmax.f32 %v665_v30, %v666_v2  ;;  %v654_v22 = vrot.slane %v653_v5, 1  ;;  %v661_v24 = vrot.slane %v660_v6, 1 }
  0x65   : > { %v674_v25 = vmax.f32 %v672_v63, %v673_v7  ;;  %v681_v31 = vmax.f32 %v679_v0, %v680_v8  ;;  %v694_v10 = vrot.slane %v693_v21, 2  ;;  %v688_v47 = vmax.f32 %v686_v15, %v687_v34 }
  0x66   : > { %v2812_v32 = vmax.f32 %v646_v1, %v647_v9  ;;  %v668_v33 = vrot.slane %v667_v11, 1  ;;  %v655_v13 = vmax.f32 %v653_v5, %v654_v22  ;;  %v2814_v42 = vmax.f32 %v660_v6, %v661_v24 }
  0x67   : > { %v675_v27 = vrot.slane %v674_v25, 1  ;;  %v682_v28 = vrot.slane %v681_v31, 1  ;;  %v695_v48 = vmax.f32 %v693_v21, %v694_v10  ;;  %v698_v49 = vsel %vm417_vm1, %v2774_v12, -inf }
  0x68   : > { %v2816_v29 = vmax.f32 %v667_v11, %v668_v33  ;;  %v699_v51 = vrot.slane %v698_v49, 4  ;;  %v705_v54 = vsel %vm417_vm1, %v351_v26, -inf  ;;  %v689_v45 = vrot.slane %v688_v47, 1 }
  0x69   : > { %v2820_v36 = vmax.f32 %v674_v25, %v675_v27  ;;  %v2822_v50 = vmax.f32 %v681_v31, %v682_v28  ;;  %v696_v55 = vrot.slane %v695_v48, 1  ;;  %v706_v56 = vrot.slane %v705_v54, 4 }
  0x6a   : > { %v712_v19 = vsel %vm417_vm1, %v352_v37, -inf  ;;  %v700_v57 = vmax.f32 %v698_v49, %v699_v51  ;;  %v719_v58 = vsel %vm417_vm1, %v353_v39, -inf  ;;  %v726_v59 = vsel %vm417_vm1, %v2778_v16, -inf }
  0x6b   : > { %v713_v30 = vrot.slane %v712_v19, 4  ;;  %v690_v60 = vmax.f32 %v688_v47, %v689_v45  ;;  %v2835_v62 = vmax.f32 %v695_v48, %v696_v55  ;;  %v707_v26 = vmax.f32 %v705_v54, %v706_v56 }
  0x6c   : > { %v720_v63 = vrot.slane %v719_v58, 4  ;;  %v701_v0 = vrot.slane %v700_v57, 2  ;;  %v727_v2 = vrot.slane %v726_v59, 4  ;;  %v733_v37 = vsel %vm417_vm1, %v354_v14, -inf }
  0x6d   : > { %v714_v1 = vmax.f32 %v712_v19, %v713_v30  ;;  %v708_v3 = vrot.slane %v707_v26, 2  ;;  %v734_v12 = vrot.slane %v733_v37, 4  ;;  %v740_v39 = vsel %vm417_vm1, %v355_v40, -inf }
  0x6e   : > { %v721_v4 = vmax.f32 %v719_v58, %v720_v63  ;;  %v702_v5 = vmax.f32 %v700_v57, %v701_v0  ;;  %v728_v7 = vmax.f32 %v726_v59, %v727_v2  ;;  %v741_v8 = vrot.slane %v740_v39, 4  ;;  %v248_v2 = vld [vmem:[%s2622_s9 + $0xc0] sm:$0xff] }
  0x6f   : > { %v715_v6 = vrot.slane %v714_v1, 2  ;;  %v709_v9 = vmax.f32 %v707_v26, %v708_v3  ;;  %v735_v15 = vmax.f32 %v733_v37, %v734_v12  ;;  %v747_v21 = vsel %vm417_vm1, %v356_v41, -inf }
  0x70   : > { %v722_v11 = vrot.slane %v721_v4, 2  ;;  %v703_v22 = vrot.slane %v702_v5, 1  ;;  %v729_v24 = vrot.slane %v728_v7, 2  ;;  %v742_v25 = vmax.f32 %v740_v39, %v741_v8 }
  0x71   : > { %v716_v14 = vmax.f32 %v714_v1, %v715_v6  ;;  %v710_v31 = vrot.slane %v709_v9, 1  ;;  %v736_v34 = vrot.slane %v735_v15, 2  ;;  %v748_v10 = vrot.slane %v747_v21, 4  ;;  %v250_v6 = vld [vmem:[%s2622_s9 + $0xd0] sm:$0xff] }
  0x72   : > { %v723_v33 = vmax.f32 %v721_v4, %v722_v11  ;;  %v704_v40 = vmax.f32 %v702_v5, %v703_v22  ;;  %v730_v28 = vmax.f32 %v728_v7, %v729_v24  ;;  %v743_v47 = vrot.slane %v742_v25, 2  ;;  %v249_v5 = vld [vmem:[%s2622_s9 + $0xc8] sm:$0xff] }
  0x73   : > { %v717_v27 = vrot.slane %v716_v14, 1  ;;  %v711_v48 = vmax.f32 %v709_v9, %v710_v31  ;;  %v737_v51 = vmax.f32 %v735_v15, %v736_v34  ;;  %v749_v54 = vmax.f32 %v747_v21, %v748_v10 }
  0x74   : > { %v724_v49 = vrot.slane %v723_v33, 1  ;;  %v731_v16 = vrot.slane %v730_v28, 1  ;;  %v744_v41 = vmax.f32 %v742_v25, %v743_v47  ;;  %v971_v55 = vsel %vm936_vm2, %v655_v13, %v2812_v32 }
  0x75   : > { %v718_v45 = vmax.f32 %v716_v14, %v717_v27  ;;  %v738_v19 = vrot.slane %v737_v51, 1  ;;  %v750_v57 = vrot.slane %v749_v54, 2  ;;  %v972_v30 = vsel %vm938_vm3, %v2814_v42, %v971_v55 }
  0x76   : > { %v725_v56 = vmax.f32 %v723_v33, %v724_v49  ;;  %v732_v58 = vmax.f32 %v730_v28, %v731_v16  ;;  %v745_v59 = vrot.slane %v744_v41, 1  ;;  %v973_v26 = vsel %vm940_vm4, %v2816_v29, %v972_v30 }
  0x77   : > { %v978_v63 = vsel %vm936_vm2, %v711_v48, %v704_v40  ;;  %v739_v0 = vmax.f32 %v737_v51, %v738_v19  ;;  %v751_v1 = vmax.f32 %v749_v54, %v750_v57  ;;  %v974_v32 = vsel %vm942_vm5, %v2820_v36, %v973_v26  ;;  %v251_v36 = vld [vmem:[%s2622_s9 + $0xd8] sm:$0xff] }
  0x78   : > { %v979_v13 = vsel %vm938_vm3, %v718_v45, %v978_v63  ;;  %v746_v37 = vmax.f32 %v744_v41, %v745_v59  ;;  %v975_v42 = vsel %vm944_vm6, %v2822_v50, %v974_v32  ;;  %v1109_v39 = vrot.slane %v2781_v35, 2 }
  0x79   : > { %v980_v3 = vsel %vm940_vm4, %v725_v56, %v979_v13  ;;  %v752_v29 = vrot.slane %v751_v1, 1  ;;  %v976_v4 = vsel %vm946_vm7, %v690_v60, %v975_v42  ;;  %v1112_v50 = vrot.slane %v2726_v52, 2 }
  0x7a   : > { %v981_v12 = vsel %vm942_vm5, %v732_v58, %v980_v3  ;;  %v977_v7 = vsel %vm948_vm8, %v2835_v62, %v976_v4  ;;  %v293_v9 = vsel %vm256_vm0, %v248_v2, -inf  ;;  %v2875_v21 = vsel %vm1102_vm11, %v1109_v39, %v1110_v38 }
  0x7b   : > { %v982_v8 = vsel %vm944_vm6, %v739_v0, %v981_v12  ;;  %v753_v11 = vmax.f32 %v751_v1, %v752_v29  ;;  %v1005_v60 = vrot.slane %v977_v7, 7  ;;  %v2880_v22 = vsel %vm1102_vm11, %v1112_v50, %v1113_v43 }
  0x7c   : > { %v983_v15 = vsel %vm946_vm7, %v746_v37, %v982_v8  ;;  %v294_v62 = vsel %vm256_vm0, %v250_v6, -inf  ;;  %v296_v14 = vsel %vm256_vm0, %v249_v5, -inf  ;;  %v297_v24 = vsel %vm256_vm0, %v251_v36, -inf }
  0x7d   : > { %v2886_v25 = vsel %vm948_vm8, %v753_v11, %v983_v15  ;;  %v2889_v31 = vsel %vm1018_vm9, 0.0, %v1005_v60  ;;  %v2893_v18 = vpack.i.bf16 %v2880_v22, %v2875_v21  ;;  %v295_v20 = vmax.f32 %v293_v9, %v294_v62 }
  0x7e   : > { %v1006_v43 = vrot.slane %v2886_v25, 7  ;;  %v298_v38 = vmax.f32 %v296_v14, %v297_v24  ;;  %v2899_v33 = vsel %vm1018_vm9, %v1004_v46, 0.0  ;;  %v2902_v34 = vsel %vm1018_vm9, %v1005_v60, 0.0 }
  0x7f   : > { %2167 = vrot.lane.b32.xlu0 %v2893_v18, %s2527_s12  ;;  %v357_v10 = vrot.slane %v295_v20, 2  ;;  %v358_v40 = vrot.slane %v295_v20, 4  ;;  %v359_v27 = vrot.slane %v295_v20, 6  ;;  %v754_v28 = vsel %vm417_vm1, %v295_v20, -inf }
  0x80   : > { %v2910_v47 = vsel %vm1018_vm9, 0.0, %v1006_v43  ;;  %v360_v44 = vrot.slane %v298_v38, 2  ;;  %v361_v46 = vrot.slane %v298_v38, 4  ;;  %v362_v48 = vrot.slane %v298_v38, 6 }
  0x81   : > { %v2151_v49 = vpack.i.bf16 %v2910_v47, %v2889_v31  ;;  %v755_v51 = vrot.slane %v754_v28, 4  ;;  %v761_v54 = vsel %vm417_vm1, %v357_v10, -inf  ;;  %v768_v45 = vsel %vm417_vm1, %v358_v40, -inf }
  0x82   : > { %v762_v16 = vrot.slane %v761_v54, 4  ;;  %v769_v41 = vrot.slane %v768_v45, 4  ;;  %v775_v55 = vsel %vm417_vm1, %v359_v27, -inf  ;;  %v782_v56 = vsel %vm417_vm1, %v298_v38, -inf }
  0x83   : > { %2152 = vrot.lane.b32.xlu1 %v2151_v49, %s2525_s10  ;;  %v756_v19 = vmax.f32 %v754_v28, %v755_v51  ;;  %v776_v57 = vrot.slane %v775_v55, 4  ;;  %v783_v30 = vrot.slane %v782_v56, 4  ;;  %v789_v58 = vsel %vm417_vm1, %v360_v44, -inf }
  0x84   : > { %v763_v59 = vmax.f32 %v761_v54, %v762_v16  ;;  %v770_v26 = vmax.f32 %v768_v45, %v769_v41  ;;  %v790_v63 = vrot.slane %v789_v58, 4  ;;  %v796_v0 = vsel %vm417_vm1, %v361_v46, -inf }
  0x85   : > { %v757_v1 = vrot.slane %v756_v19, 2  ;;  %v777_v32 = vmax.f32 %v775_v55, %v776_v57  ;;  %v784_v13 = vmax.f32 %v782_v56, %v783_v30  ;;  %v797_v2 = vrot.slane %v796_v0, 4 }
  0x86   : > { %v764_v37 = vrot.slane %v763_v59, 2  ;;  %v771_v42 = vrot.slane %v770_v26, 2  ;;  %v791_v3 = vmax.f32 %v789_v58, %v790_v63  ;;  %v803_v29 = vsel %vm417_vm1, %v362_v48, -inf }
  0x87   : > { %v758_v4 = vmax.f32 %v756_v19, %v757_v1  ;;  %v778_v12 = vrot.slane %v777_v32, 2  ;;  %v785_v39 = vrot.slane %v784_v13, 2  ;;  %v798_v5 = vmax.f32 %v796_v0, %v797_v2 }
  0x88   : > { %v765_v6 = vmax.f32 %v763_v59, %v764_v37  ;;  %v772_v36 = vmax.f32 %v770_v26, %v771_v42  ;;  %v792_v7 = vrot.slane %v791_v3, 2  ;;  %v804_v8 = vrot.slane %v803_v29, 4 }
  0x89   : > { %v759_v50 = vrot.slane %v758_v4, 1  ;;  %v779_v9 = vmax.f32 %v777_v32, %v778_v12  ;;  %v786_v11 = vmax.f32 %v784_v13, %v785_v39  ;;  %v799_v15 = vrot.slane %v798_v5, 2 }
  0x8a   : > { %v766_v60 = vrot.slane %v765_v6, 1  ;;  %v773_v62 = vrot.slane %v772_v36, 1  ;;  %v793_v14 = vmax.f32 %v791_v3, %v792_v7  ;;  %v805_v24 = vmax.f32 %v803_v29, %v804_v8 }
  0x8b   : > { %v760_v20 = vmax.f32 %v758_v4, %v759_v50  ;;  %v780_v38 = vrot.slane %v779_v9, 1  ;;  %v787_v10 = vrot.slane %v786_v11, 1  ;;  %v800_v40 = vmax.f32 %v798_v5, %v799_v15 }
  0x8c   : > { %v767_v27 = vmax.f32 %v765_v6, %v766_v60  ;;  %v774_v28 = vmax.f32 %v772_v36, %v773_v62  ;;  %v794_v44 = vrot.slane %v793_v14, 1  ;;  %v806_v46 = vrot.slane %v805_v24, 2  ;;  %v224_v6 = vld [vmem:[%s2622_s9] sm:$0xff] }
  0x8d   : > { %v781_v48 = vmax.f32 %v779_v9, %v780_v38  ;;  %v788_v49 = vmax.f32 %v786_v11, %v787_v10  ;;  %v801_v51 = vrot.slane %v800_v40, 1  ;;  %v1066_v54 = vrot.slane %v2731_v53, 1  ;;  %v226_v11 = vld [vmem:[%s2622_s9 + $0x10] sm:$0xff] }
  0x8e   : > { %v795_v45 = vmax.f32 %v793_v14, %v794_v44  ;;  %v807_v16 = vmax.f32 %v805_v24, %v806_v46  ;;  %v985_v41 = vsel %vm936_vm2, %v767_v27, %v760_v20  ;;  %v1067_v55 = vrot.slane %v2899_v33, 1  ;;  %v225_v14 = vld [vmem:[%s2622_s9 + $0x8] sm:$0xff]  ;;  %v227_v24 = vld [vmem:[%s2622_s9 + $0x18] sm:$0xff] }
  0x8f   : > { %v802_v56 = vmax.f32 %v800_v40, %v801_v51  ;;  %v986_v19 = vsel %vm938_vm3, %v774_v28, %v985_v41  ;;  %v1069_v57 = vrot.slane %v2889_v31, 1  ;;  %v1070_v30 = vrot.slane %v2902_v34, 1 }
  0x90   : > { %v808_v58 = vrot.slane %v807_v16, 1  ;;  %v987_v59 = vsel %vm940_vm4, %v781_v48, %v986_v19  ;;  %v2930_v26 = vsel %vm1053_vm10, %v1066_v54, %v1067_v55  ;;  %v1115_v63 = vrot.slane %v2731_v53, 2 }
  0x91   : > { %v988_v0 = vsel %vm942_vm5, %v788_v49, %v987_v59  ;;  %v2935_v1 = vsel %vm1053_vm10, %v1069_v57, %v1070_v30  ;;  %v1116_v32 = vrot.slane %v2899_v33, 2  ;;  %v1118_v42 = vrot.slane %v2889_v31, 2 }
  0x92   : > { %v809_v13 = vmax.f32 %v807_v16, %v808_v58  ;;  %v989_v2 = vsel %vm944_vm6, %v795_v45, %v988_v0  ;;  %v2941_v37 = vpack.i.bf16 %v2935_v1, %v2930_v26  ;;  %v1119_v4 = vrot.slane %v2902_v34, 2 }
  0x93   : > { %v990_v3 = vsel %vm946_vm7, %v802_v56, %v989_v2  ;;  %v1117_v29 = vsel %vm1102_vm11, %v1115_v63, %v1116_v32  ;;  %v2146_v12 = vpack.i.bf16 %v2889_v31, %v2731_v53  ;;  %v2171_v39 = vpack.i.bf16 %v2930_v26, %v2761_v61 }
  0x94   : > { %v991_v33 = vsel %vm948_vm8, %v809_v13, %v990_v3  ;;  %2182 = vrot.lane.b32.xlu0 %v2941_v37, %s2528_s13  ;;  %v1034_v5 = vsel %vm1018_vm9, %v1006_v43, 0.0  ;;  %v1121_v34 = vrot.slane %v2910_v47, 2  ;;  %v2960_v7 = vsel %vm1102_vm11, %v1118_v42, %v1119_v4 }
  0x95   : > { %v1007_v36 = vrot.slane %v991_v33, 7  ;;  %2147 = vrot.lane.b32.xlu2 %v2146_v12, %s2529_s14  ;;  %v1122_v8 = vrot.slane %v1034_v5, 2  ;;  %v2176_v50 = vpack.i.bf16 %v1117_v29, %v2880_v22  ;;  %v2965_v9 = vpack.i.bf16 %v2960_v7, %v1117_v29 }
  0x96   : > { %v1072_v25 = vrot.slane %v2910_v47, 1  ;;  %v1073_v43 = vrot.slane %v1034_v5, 1  ;;  %v257_v20 = vsel %vm256_vm0, %v224_v6, -inf  ;;  %v258_v44 = vsel %vm256_vm0, %v226_v11, -inf }
  0x97   : > { %v2970_v15 = vsel %vm1018_vm9, 0.0, %v1007_v36  ;;  %v1123_v60 = vsel %vm1102_vm11, %v1121_v34, %v1122_v8  ;;  %v1035_v62 = vsel %vm1018_vm9, %v1007_v36, 0.0  ;;  %v259_v46 = vmax.f32 %v257_v20, %v258_v44 }
  0x98   : > { %v2156_v22 = vpack.i.bf16 %v2970_v15, %v2910_v47  ;;  %v2206_v38 = vpack.i.bf16 %v1123_v60, %v2960_v7  ;;  %v1075_v10 = vrot.slane %v2970_v15, 1  ;;  %v1076_v40 = vrot.slane %v1035_v62, 1 }
  0x99   : > { %v1124_v27 = vrot.slane %v2970_v15, 2  ;;  %v1125_v28 = vrot.slane %v1035_v62, 2  ;;  %v260_v48 = vsel %vm256_vm0, %v225_v14, -inf  ;;  %v261_v49 = vsel %vm256_vm0, %v227_v24, -inf }
  0x9a   : > { %2157 = vrot.lane.b32.xlu1 %v2156_v22, %s2529_s14  ;;  %v2987_v51 = vsel %vm1053_vm10, %v1072_v25, %v1073_v43  ;;  %v2990_v54 = vsel %vm1053_vm10, %v1075_v10, %v1076_v40  ;;  %v262_v16 = vmax.f32 %v260_v48, %v261_v49  ;;  %v321_v55 = vrot.slane %v259_v46, 2 }
  0x9b   : > { %v2993_v45 = vsel %vm1102_vm11, %v1124_v27, %v1125_v28  ;;  %v322_v56 = vrot.slane %v259_v46, 4  ;;  %v2530_v19 = vmov 0.0   ;;  %v323_v30 = vrot.slane %v259_v46, 6 }
  0x9c   : > { %2197 = vrot.lane.b32.xlu0 %v2965_v9, %s2527_s12  ;;  %v2998_v41 = vpack.i.bf16 %v2993_v45, %v1123_v60  ;;  %v3000_v57 = vrot.slane %v2530_v19, 7  ;;  %v324_v58 = vrot.slane %v262_v16, 2  ;;  %v325_v59 = vrot.slane %v262_v16, 4 }
  0x9d   : > { %2177 = vrot.lane.b32.xlu2 %v2176_v50, %s2531_s15  ;;  %v326_v63 = vrot.slane %v262_v16, 6  ;;  %v418_v0 = vsel %vm417_vm1, %v259_v46, -inf  ;;  %v425_v32 = vsel %vm417_vm1, %v321_v55, -inf  ;;  %v432_v13 = vsel %vm417_vm1, %v322_v56, -inf }
  0x9e   : > { %v446_v2 = vsel %vm417_vm1, %v262_v16, -inf  ;;  %v419_v42 = vrot.slane %v418_v0, 4  ;;  %v426_v3 = vrot.slane %v425_v32, 4  ;;  %v433_v29 = vrot.slane %v432_v13, 4 }
  0x9f   : > { %v439_v4 = vsel %vm417_vm1, %v323_v30, -inf  ;;  %v447_v33 = vrot.slane %v446_v2, 4  ;;  %v453_v5 = vsel %vm417_vm1, %v324_v58, -inf  ;;  %v460_v34 = vsel %vm417_vm1, %v325_v59, -inf }
  0xa0   : > { %v440_v12 = vrot.slane %v439_v4, 4  ;;  %v420_v6 = vmax.f32 %v418_v0, %v419_v42  ;;  %v427_v36 = vmax.f32 %v425_v32, %v426_v3  ;;  %v434_v7 = vmax.f32 %v432_v13, %v433_v29 }
  0xa1   : > { %v454_v8 = vrot.slane %v453_v5, 4  ;;  %v448_v25 = vmax.f32 %v446_v2, %v447_v33  ;;  %v461_v43 = vrot.slane %v460_v34, 4  ;;  %v467_v11 = vsel %vm417_vm1, %v326_v63, -inf  ;;  %v252_v33 = vld [vmem:[%s2622_s9 + $0xe0] sm:$0xff] }
  0xa2   : > { %2172 = vrot.lane.b32.xlu1 %v2171_v39, %s2532_s16  ;;  %v441_v50 = vmax.f32 %v439_v4, %v440_v12  ;;  %v421_v60 = vrot.slane %v420_v6, 2  ;;  %v428_v62 = vrot.slane %v427_v36, 2  ;;  %v435_v14 = vrot.slane %v434_v7, 2 }
  0xa3   : > { %v455_v24 = vmax.f32 %v453_v5, %v454_v8  ;;  %v449_v22 = vrot.slane %v448_v25, 2  ;;  %v462_v10 = vmax.f32 %v460_v34, %v461_v43  ;;  %v468_v40 = vrot.slane %v467_v11, 4  ;;  %v254_v5 = vld [vmem:[%s2622_s9 + $0xf0] sm:$0xff]  ;;  %v255_v43 = vld [vmem:[%s2622_s9 + $0xf8] sm:$0xff] }
  0xa4   : > { %2207 = vrot.lane.b32.xlu0 %v2206_v38, %s2531_s15  ;;  %v442_v20 = vrot.slane %v441_v50, 2  ;;  %v422_v61 = vmax.f32 %v420_v6, %v421_v60  ;;  %v429_v26 = vmax.f32 %v427_v36, %v428_v62  ;;  %v436_v39 = vmax.f32 %v434_v7, %v435_v14  ;;  %v253_v7 = vld [vmem:[%s2622_s9 + $0xe8] sm:$0xff]  ;;  %s2481_s9 = scalar_lea.hbm %s3534_s5, 128 }
  0xa5   : > { %2192 = vrot.lane.b32.xlu2 %v2941_v37, %s2526_s11  ;;  %v456_v27 = vrot.slane %v455_v24, 2  ;;  %v450_v44 = vmax.f32 %v448_v25, %v449_v22  ;;  %v463_v46 = vrot.slane %v462_v10, 2  ;;  %v469_v48 = vmax.f32 %v467_v11, %v468_v40 }
  0xa6   : > { %v443_v28 = vmax.f32 %v441_v50, %v442_v20  ;;  %v423_v49 = vrot.slane %v422_v61, 1  ;;  %v430_v16 = vrot.slane %v429_v26, 1  ;;  %v437_v55 = vrot.slane %v436_v39, 1 }
  0xa7   : > { %v457_v56 = vmax.f32 %v455_v24, %v456_v27  ;;  %v451_v19 = vrot.slane %v450_v44, 1  ;;  %v464_v30 = vmax.f32 %v462_v10, %v463_v46  ;;  %v470_v58 = vrot.slane %v469_v48, 2 }
  0xa8   : > { %v444_v38 = vrot.slane %v443_v28, 1  ;;  %v424_v59 = vmax.f32 %v422_v61, %v423_v49  ;;  %v431_v37 = vmax.f32 %v429_v26, %v430_v16  ;;  %v438_v63 = vmax.f32 %v436_v39, %v437_v55 }
  0xa9   : > { %v458_v0 = vrot.slane %v457_v56, 1  ;;  %v452_v13 = vmax.f32 %v450_v44, %v451_v19  ;;  %v465_v2 = vrot.slane %v464_v30, 1  ;;  %v471_v42 = vmax.f32 %v469_v48, %v470_v58 }
  0xaa   : > { %2187 = vrot.lane.b32.xlu1 %v2965_v9, %s2533_s17  ;;  %v445_v32 = vmax.f32 %v443_v28, %v444_v38  ;;  %v937_v29 = vsel %vm936_vm2, %v431_v37, %v424_v59  ;;  %v3023_v4 = vsel %vm1018_vm9, 0.0, %v3000_v57  ;;  %v3027_v12 = vsel %vm1018_vm9, %v3000_v57, 0.0 }
  0xab   : > { %v459_v3 = vmax.f32 %v457_v56, %v458_v0  ;;  %v466_v9 = vmax.f32 %v464_v30, %v465_v2  ;;  %v472_v34 = vrot.slane %v471_v42, 1  ;;  %v939_v6 = vsel %vm938_vm3, %v438_v63, %v937_v29 }
  0xac   : > { %2217 = vrot.lane.b32.xlu0 %v2998_v41, %s2533_s17  ;;  %v1103_v36 = vrot.slane %v3023_v4, 2  ;;  %v2221_v8 = vpack.i.bf16 %v2990_v54, %v2987_v51  ;;  %v941_v50 = vsel %vm940_vm4, %v445_v32, %v939_v6  ;;  %v1104_v57 = vrot.slane %v3027_v12, 2 }
  0xad   : > { %v2201_v25 = vpack.i.bf16 %v2987_v51, %v2935_v1  ;;  %v473_v11 = vmax.f32 %v471_v42, %v472_v34  ;;  %v943_v60 = vsel %vm942_vm5, %v452_v13, %v941_v50  ;;  %v299_v62 = vsel %vm256_vm0, %v252_v33, -inf }
  0xae   : > { %v300_v14 = vsel %vm256_vm0, %v254_v5, -inf  ;;  %v945_v24 = vsel %vm944_vm6, %v459_v3, %v943_v60  ;;  %v302_v22 = vsel %vm256_vm0, %v253_v7, -inf  ;;  %v3051_v40 = vsel %vm1102_vm11, %v1103_v36, %v1104_v57 }
  0xaf   : > { %2202 = vrot.lane.b32.xlu2 %v2201_v25, %s2532_s16  ;;  %v301_v20 = vmax.f32 %v299_v62, %v300_v14  ;;  %v947_v10 = vsel %vm946_vm7, %v466_v9, %v945_v24  ;;  %v303_v1 = vsel %vm256_vm0, %v255_v43, -inf }
  0xb0   : > { %v949_v51 = vsel %vm948_vm8, %v473_v11, %v947_v10  ;;  %v304_v61 = vmax.f32 %v302_v22, %v303_v1 }
  0xb1   : > { %v363_v26 = vrot.slane %v301_v20, 2  ;;  %v364_v39 = vrot.slane %v301_v20, 4  ;;  %v1001_v27 = vrot.slane %v949_v51, 7  ;;  %v365_v28 = vrot.slane %v301_v20, 6 }
  0xb2   : > { %2222 = vrot.lane.b32.xlu1 %v2221_v8, %s2526_s11  ;;  %v810_v44 = vsel %vm417_vm1, %v301_v20, -inf  ;;  %v366_v46 = vrot.slane %v304_v61, 2  ;;  %v367_v48 = vrot.slane %v304_v61, 4  ;;  %v368_v49 = vrot.slane %v304_v61, 6 }
  0xb3   : > { %v811_v16 = vrot.slane %v810_v44, 4  ;;  %v3058_v55 = vsel %vm1018_vm9, 0.0, %v1001_v27  ;;  %v3061_v56 = vsel %vm1018_vm9, %v1001_v27, 0.0  ;;  %v817_v38 = vsel %vm417_vm1, %v363_v26, -inf }
  0xb4   : > { %2232 = vrot.lane.b32.xlu0 %v2998_v41, %s2527_s12  ;;  %v824_v19 = vsel %vm417_vm1, %v364_v39, -inf  ;;  %v1106_v30 = vrot.slane %v3058_v55, 2  ;;  %v1107_v58 = vrot.slane %v3061_v56, 2  ;;  %v818_v37 = vrot.slane %v817_v38, 4 }
  0xb5   : > { %v812_v59 = vmax.f32 %v810_v44, %v811_v16  ;;  %v825_v63 = vrot.slane %v824_v19, 4  ;;  %v831_v0 = vsel %vm417_vm1, %v365_v28, -inf  ;;  %v838_v32 = vsel %vm417_vm1, %v304_v61, -inf }
  0xb6   : > { %v845_v13 = vsel %vm417_vm1, %v366_v46, -inf  ;;  %v3073_v2 = vsel %vm1102_vm11, %v1106_v30, %v1107_v58  ;;  %v819_v42 = vmax.f32 %v817_v38, %v818_v37  ;;  %v832_v3 = vrot.slane %v831_v0, 4 }
  0xb7   : > { %v813_v41 = vrot.slane %v812_v59, 2  ;;  %2212 = vrot.lane.b32.xlu2 %v2221_v8, %s2528_s13  ;;  %v2236_v29 = vpack.i.bf16 %v3073_v2, %v3051_v40  ;;  %v826_v33 = vmax.f32 %v824_v19, %v825_v63  ;;  %v839_v5 = vrot.slane %v838_v32, 4 }
  0xb8   : > { %v846_v9 = vrot.slane %v845_v13, 4  ;;  %v820_v6 = vrot.slane %v819_v42, 2  ;;  %v833_v36 = vmax.f32 %v831_v0, %v832_v3  ;;  %v852_v7 = vsel %vm417_vm1, %v367_v48, -inf }
  0xb9   : > { %v814_v34 = vmax.f32 %v812_v59, %v813_v41  ;;  %v827_v50 = vrot.slane %v826_v33, 2  ;;  %v840_v57 = vmax.f32 %v838_v32, %v839_v5  ;;  %v853_v43 = vrot.slane %v852_v7, 4 }
  0xba   : > { %2237 = vrot.lane.b32.xlu1 %v2236_v29, %s2527_s12  ;;  %v847_v25 = vmax.f32 %v845_v13, %v846_v9  ;;  %v821_v60 = vmax.f32 %v819_v42, %v820_v6  ;;  %v834_v8 = vrot.slane %v833_v36, 2  ;;  %v859_v62 = vsel %vm417_vm1, %v368_v49, -inf }
  0xbb   : > { %v815_v11 = vrot.slane %v814_v34, 1  ;;  %v828_v14 = vmax.f32 %v826_v33, %v827_v50  ;;  %v841_v24 = vrot.slane %v840_v57, 2  ;;  %v854_v22 = vmax.f32 %v852_v7, %v853_v43 }
  0xbc   : > { %v848_v20 = vrot.slane %v847_v25, 2  ;;  %v822_v1 = vrot.slane %v821_v60, 1  ;;  %v835_v51 = vmax.f32 %v833_v36, %v834_v8  ;;  %v860_v61 = vrot.slane %v859_v62, 4 }
  0xbd   : > { %v816_v10 = vmax.f32 %v814_v34, %v815_v11  ;;  %v829_v26 = vrot.slane %v828_v14, 1  ;;  %v842_v39 = vmax.f32 %v840_v57, %v841_v24  ;;  %v855_v28 = vrot.slane %v854_v22, 2 }
  0xbe   : > { %v849_v27 = vmax.f32 %v847_v25, %v848_v20  ;;  %v823_v44 = vmax.f32 %v821_v60, %v822_v1  ;;  %v836_v46 = vrot.slane %v835_v51, 1  ;;  %v861_v48 = vmax.f32 %v859_v62, %v860_v61 }
  0xbf   : > { %v2246_v16 = vpack.i.bf16 %v2781_v35, %v3058_v55  ;;  %v830_v38 = vmax.f32 %v828_v14, %v829_v26  ;;  %v843_v49 = vrot.slane %v842_v39, 1  ;;  %v856_v30 = vmax.f32 %v854_v22, %v855_v28  ;;  %v870_v28 = vld [vmem:[%s3530_s1 + $0x10] sm:$0x3] }
  0xc0   : > { %v850_v19 = vrot.slane %v849_v27, 1  ;;  %v837_v58 = vmax.f32 %v835_v51, %v836_v46  ;;  %v862_v59 = vrot.slane %v861_v48, 2  ;;  %v992_v37 = vsel %vm936_vm2, %v823_v44, %v816_v10 }
  0xc1   : > { %2247 = vrot.lane.b32.xlu0 %v2246_v16, %s2525_s10  ;;  %v844_v63 = vmax.f32 %v842_v39, %v843_v49  ;;  %v857_v32 = vrot.slane %v856_v30, 1  ;;  %v993_v13 = vsel %vm938_vm3, %v830_v38, %v992_v37  ;;  %v1054_v3 = vrot.slane %v3023_v4, 1  ;;  %v2073_v49 = vld [vmem:[%s3530_s1] sm:$0xff] }
  0xc2   : > { %v851_v0 = vmax.f32 %v849_v27, %v850_v19  ;;  %v863_v41 = vmax.f32 %v861_v48, %v862_v59  ;;  %v994_v42 = vsel %vm940_vm4, %v837_v58, %v993_v13  ;;  %v1055_v29 = vrot.slane %v3027_v12, 1 }
  0xc3   : > { %v858_v33 = vmax.f32 %v856_v30, %v857_v32  ;;  %v995_v5 = vsel %vm942_vm5, %v844_v63, %v994_v42  ;;  %v1057_v9 = vrot.slane %v3058_v55, 1  ;;  %v1058_v34 = vrot.slane %v3061_v56, 1 }
  0xc4   : > { %v864_v6 = vrot.slane %v863_v41, 1  ;;  %v996_v36 = vsel %vm944_vm6, %v851_v0, %v995_v5  ;;  %v3094_v7 = vsel %vm1053_vm10, %v1054_v3, %v1055_v29  ;;  %v2266_v26 = vpack.i.bf16 %v2875_v21, %v3073_v2  ;;  %v2143_v2 = vpop.permute.xlu1 %2142 }
  0xc5   : > { %v997_v50 = vsel %vm946_vm7, %v858_v33, %v996_v36  ;;  %v1059_v57 = vsel %vm1053_vm10, %v1057_v9, %v1058_v34  ;;  %v2276_v39 = vpack.i.bf16 %v2726_v52, %v2781_v35  ;;  %v1387_v44 = vunpack.c.l.b16 %v870_v28 }
  0xc6   : > { %v865_v25 = vmax.f32 %v863_v41, %v864_v6  ;;  %v2226_v12 = vpack.i.bf16 %v1059_v57, %v3094_v7  ;;  %v2256_v61 = vpack.i.bf16 %v2797_v17, %v1059_v57  ;;  %v2145_v33 = vunpack.i.h.bf16 %v2143_v2 }
  0xc7   : > { %v1390_v48 = vpack.c.b16 %v1387_v44, %v1387_v44  ;;  %v2144_v5 = vunpack.i.l.bf16 %v2143_v2  ;;  %vm1338_vm1 = vcmask 162816   ;;  %vm1347_vm2 = vcmask 195584  }
  0xc8   : > { %v998_v43 = vsel %vm948_vm8, %v865_v25, %v997_v50  ;;  %2227 = vrot.lane.b32.xlu2 %v2226_v12, %s2526_s11  ;;  %vm1356_vm3 = vcmask 228352   ;;  %vm1365_vm4 = vcmask 261120   ;;  %vm1393_vm5 = vcmask 293888   ;;  %s2535_s11 = smov 48  }
  0xc9   : > { %v1008_v11 = vrot.slane %v998_v43, 7  ;;  %v1408_v16 = vsel %vm1406_vm12, %v1390_v48, 0  ;;  %vm1803_vm6 = vcmask 326656   ;;  %vm1812_vm7 = vcmask 392192  }
  0xca   : > { %2080 = vmatpush.bf16.msra.mxu3 %v1408_v16  ;;  %1415 = vmatpush.bf16.msra.mxu0 %v1408_v16  ;;  %vm1821_vm8 = vcmask 457728  }
  0xcb   : > { %v1027_v56 = vsel %vm1018_vm9, 0.0, %v1008_v11  ;;  %v1036_v60 = vsel %vm1018_vm9, %v1008_v11, 0.0 }
  0xcc   : > { %v1177_v8 = vrot.slane %v1027_v56, 1  ;;  %v1178_v62 = vrot.slane %v1036_v60, 1  ;;  %v1204_v14 = vrot.slane %v1027_v56, 2  ;;  %v1205_v24 = vrot.slane %v1036_v60, 2 }
  0xcd   : > { %v2241_v20 = vpack.i.bf16 %v1027_v56, %v2970_v15 }
  0xce   : > { %v1179_v22 = vsel %vm1053_vm10, %v1177_v8, %v1178_v62  ;;  %v1206_v10 = vsel %vm1102_vm11, %v1204_v14, %v1205_v24 }
  0xcf   : > { %v2251_v1 = vpack.i.bf16 %v1179_v22, %v2990_v54  ;;  %v2261_v51 = vpack.i.bf16 %v1206_v10, %v2993_v45  ;;  %v2271_v54 = vpack.i.bf16 %v3023_v4, %v1027_v56  ;;  %v2281_v45 = vpack.i.bf16 %v3094_v7, %v1179_v22 }
  0xd0   : > { %2242 = vrot.lane.b32.xlu2 %v2241_v20, %s2525_s10  ;;  %v2291_v27 = vpack.i.bf16 %v3051_v40, %v1206_v10  ;;  %v2163_v21 = vpop.permute.xlu0 %2162  ;;  %s2534_s10 = smov 40  }
  0xd1   : > { %2252 = vrot.lane.b32.xlu1 %v2251_v1, %s2532_s16  ;;  %2262 = vrot.lane.b32.xlu0 %v2261_v51, %s2531_s15  ;;  %v2165_v59 = vunpack.i.h.bf16 %v2163_v21  ;;  %v2164_v37 = vunpack.i.l.bf16 %v2163_v21 }
  0xd3   : > { %v1306_v13 = vsel %vm256_vm0, %v2726_v52, %v2165_v59  ;;  %v1305_v41 = vsel %vm256_vm0, %v2781_v35, %v2164_v37 }
  0xd8   : > { %2257 = vrot.lane.b32.xlu2 %v2256_v61, %s2532_s16 }
  0xd9   : > { %2267 = vrot.lane.b32.xlu1 %v2266_v26, %s2531_s15  ;;  %2277 = vrot.lane.b32.xlu0 %v2276_v39, %s2529_s14  ;;  %s2537_s15 = smov 56  }
  0xe0   : > { %2272 = vrot.lane.b32.xlu2 %v2271_v54, %s2529_s14 }
  0xe1   : > { %2282 = vrot.lane.b32.xlu1 %v2281_v45, %s2528_s13  ;;  %2292 = vrot.lane.b32.xlu0 %v2291_v27, %s2533_s17 }
  0xe8   : > { %2287 = vrot.lane.b32.xlu2 %v2803_v23, %s2528_s13  ;;  %v2074_v23 = vld [vmem:[%s3530_s1 + $0x8] sm:$0xff]  ;;  %s2536_s13 = smov 64  }
  0xe9   : > { %2297 = vrot.lane.b32.xlu1 %v2893_v18, %s2533_s17  ;;  %2081 = vmatpush.bf16.msra.mxu3 %v2074_v23 }
  0xea   : > { %1416 = vmatpush.bf16.msra.mxu0 %v2074_v23 }
  0xed   : > { %2082 = vmatpush.bf16.msra.mxu3 %v2073_v49 }
  0xee   : > { %1417 = vmatpush.bf16.msra.mxu0 %v2073_v49 }
  0xef   : > { %v2148_v17 = vpop.permute.xlu2 %2147 }
  0xf0   : > { %v2150_v11 = vunpack.i.h.bf16 %v2148_v17  ;;  %v2149_v56 = vunpack.i.l.bf16 %v2148_v17 }
  0xf1   : > { %v2168_v38 = vpop.permute.xlu0 %2167 }
  0xf2   : > { %v2170_v63 = vunpack.i.h.bf16 %v2168_v38  ;;  %v2169_v0 = vunpack.i.l.bf16 %v2168_v38 }
  0xf4   : > { %v1314_v3 = vsel %vm1311_vm13, %v1305_v41, %v2169_v0  ;;  %v1315_v29 = vsel %vm1311_vm13, %v1306_v13, %v2170_v63 }
  0xf5   : > { %v3135_v18 = vpop.permute.xlu1 %2152  ;;  %v1323_v52 = vsel %vm1320_vm14, %v1314_v3, %v2144_v5  ;;  %v1324_v57 = vsel %vm1320_vm14, %v1315_v29, %v2145_v33 }
  0xf6   : > { %v2154_v48 = vunpack.i.l.bf16 %v3135_v18 }
  0xf7   : > { %v2178_v46 = vpop.permute.xlu2 %2177 }
  0xf8   : > { %v2180_v36 = vunpack.i.h.bf16 %v2178_v46  ;;  %v2179_v50 = vunpack.i.l.bf16 %v2178_v46  ;;  %v2155_v46 = vunpack.i.h.bf16 %v3135_v18 }
  0xff   : > { %v2193_v19 = vpop.permute.xlu2 %2192 }
 0x100   : > { %v2195_v8 = vunpack.i.h.bf16 %v2193_v19  ;;  %v2194_v62 = vunpack.i.l.bf16 %v2193_v19 }
 0x102   : > { %v1308_v54 = vsel %vm256_vm0, %v2889_v31, %v2195_v8  ;;  %v1307_v45 = vsel %vm256_vm0, %v2731_v53, %v2194_v62 }
 0x106   : > { %v2183_v30 = vpop.permute.xlu0 %2182 }
 0x107   : > { %v2185_v10 = vunpack.i.h.bf16 %v2183_v30  ;;  %v2184_v1 = vunpack.i.l.bf16 %v2183_v30 }
 0x109   : > { %v3142_v32 = vpop.permute.xlu2 %2202 }
 0x10a   : > { %v2205_v16 = vunpack.i.h.bf16 %v3142_v32  ;;  %v2204_v53 = vunpack.i.l.bf16 %v3142_v32 }
 0x10c   : > { %v3140_v58 = vpop.permute.xlu1 %2157 }
 0x10d   : > { %v2160_v32 = vunpack.i.h.bf16 %v3140_v58  ;;  %v2159_v13 = vunpack.i.l.bf16 %v3140_v58 }
 0x10e   : > { %v2198_v42 = vpop.permute.xlu0 %2197 }
 0x10f   : > { %v2200_v14 = vunpack.i.h.bf16 %v2198_v42  ;;  %v2199_v24 = vunpack.i.l.bf16 %v2198_v42 }
 0x111   : > { %v2213_v60 = vpop.permute.xlu2 %2212  ;;  %v1317_v21 = vsel %vm1311_vm13, %v1308_v54, %v2200_v14  ;;  %v1316_v2 = vsel %vm1311_vm13, %v1307_v45, %v2199_v24 }
 0x112   : > { %v1325_v38 = vsel %vm1320_vm14, %v1316_v2, %v2154_v48  ;;  %v1326_v23 = vsel %vm1320_vm14, %v1317_v21, %v2155_v46  ;;  %v2215_v41 = vunpack.i.h.bf16 %v2213_v60  ;;  %v2214_v42 = vunpack.i.l.bf16 %v2213_v60 }
 0x113   : > { %v1334_v59 = vsel %vm1329_vm15, %v1325_v38, %v2204_v53  ;;  %v1335_v37 = vsel %vm1329_vm15, %v1326_v23, %v2205_v16 }
 0x114   : > { %v2173_v9 = vpop.permute.xlu1 %2172 }
 0x115   : > { %v2175_v34 = vunpack.i.h.bf16 %v2173_v9  ;;  %v2174_v6 = vunpack.i.l.bf16 %v2173_v9 }
 0x116   : > { %v2208_v61 = vpop.permute.xlu0 %2207 }
 0x117   : > { %v1332_v35 = vsel %vm1329_vm15, %v1323_v52, %v2174_v6  ;;  %v1333_v25 = vsel %vm1329_vm15, %v1324_v57, %v2175_v34  ;;  %v2210_v49 = vunpack.i.h.bf16 %v2208_v61  ;;  %v2209_v19 = vunpack.i.l.bf16 %v2208_v61 }
 0x118   : > { %v1341_v12 = vsel %vm1338_vm1, %v1332_v35, %v2179_v50  ;;  %v1342_v43 = vsel %vm1338_vm1, %v1333_v25, %v2180_v36 }
 0x119   : > { %v1350_v20 = vsel %vm1347_vm2, %v1341_v12, %v2149_v56  ;;  %v1351_v22 = vsel %vm1347_vm2, %v1342_v43, %v2150_v11  ;;  %v1343_v18 = vsel %vm1338_vm1, %v1334_v59, %v2209_v19  ;;  %v1344_v63 = vsel %vm1338_vm1, %v1335_v37, %v2210_v49 }
 0x11a   : > { %v1359_v27 = vsel %vm1356_vm3, %v1350_v20, %v2184_v1  ;;  %v1360_v17 = vsel %vm1356_vm3, %v1351_v22, %v2185_v10  ;;  %v1352_v3 = vsel %vm1347_vm2, %v1343_v18, %v2159_v13  ;;  %v1353_v29 = vsel %vm1347_vm2, %v1344_v63, %v2160_v32 }
 0x11b   : > { %v1361_v34 = vsel %vm1356_vm3, %v1352_v3, %v2214_v42  ;;  %v1362_v6 = vsel %vm1356_vm3, %v1353_v29, %v2215_v41 }
 0x11c   : > { %v2188_v51 = vpop.permute.xlu1 %2187 }
 0x11d   : > { %v2190_v26 = vunpack.i.h.bf16 %v2188_v51  ;;  %v2189_v39 = vunpack.i.l.bf16 %v2188_v51 }
 0x11e   : > { %v2218_v0 = vpop.permute.xlu0 %2217 }
 0x11f   : > { %v1368_v28 = vsel %vm1365_vm4, %v1359_v27, %v2189_v39  ;;  %v1369_v44 = vsel %vm1365_vm4, %v1360_v17, %v2190_v26  ;;  %v2220_v33 = vunpack.i.h.bf16 %v2218_v0  ;;  %v2219_v5 = vunpack.i.l.bf16 %v2218_v0 }
 0x120   : > { %v1375_v31 = vpack.c.bf16 %v1369_v44, %v1368_v28 }
 0x121   : > { %v1370_v36 = vsel %vm1365_vm4, %v1361_v34, %v2219_v5  ;;  %v1371_v50 = vsel %vm1365_vm4, %v1362_v6, %v2220_v33 }
 0x122   : > { %2044 = vmatmul.msk.bf16.vlgmr.msra.gmra.mxu3 %vm1393_vm5, %v1375_v31  ;;  %v2228_v30 = vpop.permute.xlu2 %2227  ;;  %v1376_v58 = vpack.c.bf16 %v1371_v50, %v1370_v36 }
 0x123   : > { %v2230_v11 = vunpack.i.h.bf16 %v2228_v30  ;;  %v2229_v56 = vunpack.i.l.bf16 %v2228_v30 }
 0x124   : > { %v2223_v52 = vpop.permute.xlu1 %2222 }
 0x125   : > { %v2225_v62 = vunpack.i.h.bf16 %v2223_v52  ;;  %v2224_v14 = vunpack.i.l.bf16 %v2223_v52  ;;  %v1304_v24 = vsel %vm256_vm0, %v3058_v55, %v2230_v11  ;;  %v1303_v20 = vsel %vm256_vm0, %v3023_v4, %v2229_v56 }
 0x126   : > { %v2233_v57 = vpop.permute.xlu0 %2232 }
 0x127   : > { %v2235_v1 = vunpack.i.h.bf16 %v2233_v57  ;;  %v2234_v51 = vunpack.i.l.bf16 %v2233_v57  ;;  %v1310_v39 = vsel %vm256_vm0, %v2970_v15, %v2225_v62  ;;  %v1309_v54 = vsel %vm256_vm0, %v2910_v47, %v2224_v14 }
 0x128   : > { %vm1883_vm0 = vcmask 1043456  }
 0x129   : > { %v1319_v2 = vsel %vm1311_vm13, %v1310_v39, %v2235_v1  ;;  %v1318_v28 = vsel %vm1311_vm13, %v1309_v54, %v2234_v51  ;;  %v871_v39 = vld [vmem:[%s3531_s2] sm:$0x3] }
 0x12a   : > { %v2243_v9 = vpop.permute.xlu2 %2242  ;;  %v3233_v54 = vperm.slane %v871_v39, 0 }
 0x12b   : > { %v2245_v48 = vunpack.i.h.bf16 %v2243_v9  ;;  %v2244_v15 = vunpack.i.l.bf16 %v2243_v9 }
 0x12c   : > { %v2238_v25 = vpop.permute.xlu1 %2237 }
 0x12d   : > { %v2240_v22 = vunpack.i.h.bf16 %v2238_v25  ;;  %v2239_v10 = vunpack.i.l.bf16 %v2238_v25  ;;  %v1328_v3 = vsel %vm1320_vm14, %v1319_v2, %v2245_v48  ;;  %v1327_v29 = vsel %vm1320_vm14, %v1318_v28, %v2244_v15 }
 0x12f   : > { %v1312_v27 = vsel %vm1311_vm13, %v1303_v20, %v2239_v10  ;;  %v1313_v55 = vsel %vm1311_vm13, %v1304_v24, %v2240_v22 }
 0x132   : > { %2045 = vmatmul.msk.bf16.gmra.mxu3 %vm1393_vm5, %v1376_v58  ;;  %v2258_v35 = vpop.permute.xlu2 %2257 }
 0x133   : > { %v2248_v12 = vpop.permute.xlu0 %2247  ;;  %v2260_v17 = vunpack.i.h.bf16 %v2258_v35  ;;  %v2259_v21 = vunpack.i.l.bf16 %v2258_v35 }
 0x134   : > { %v2250_v61 = vunpack.i.h.bf16 %v2248_v12  ;;  %v2249_v26 = vunpack.i.l.bf16 %v2248_v12 }
 0x136   : > { %v1321_v44 = vsel %vm1320_vm14, %v1312_v27, %v2249_v26  ;;  %v1322_v46 = vsel %vm1320_vm14, %v1313_v55, %v2250_v61  ;;  %v3235_v27 = vperm.slane %v871_v39, 1 }
 0x137   : > { %v1330_v37 = vsel %vm1329_vm15, %v1321_v44, %v2259_v21  ;;  %v1331_v18 = vsel %vm1329_vm15, %v1322_v46, %v2260_v17 }
 0x13a   : > { %v3188_v43 = vpop.permute.xlu2 %2272 }
 0x13b   : > { %v2275_v6 = vunpack.i.h.bf16 %v3188_v43  ;;  %v2274_v36 = vunpack.i.l.bf16 %v3188_v43 }
 0x142   : > { %v2288_v45 = vpop.permute.xlu2 %2287 }
 0x143   : > { %v2253_v60 = vpop.permute.xlu1 %2252  ;;  %v2263_v8 = vpop.permute.xlu0 %2262  ;;  %v2290_v47 = vunpack.i.h.bf16 %v2288_v45  ;;  %v2289_v53 = vunpack.i.l.bf16 %v2288_v45 }
 0x144   : > { %v2255_v30 = vunpack.i.h.bf16 %v2253_v60  ;;  %v2254_v59 = vunpack.i.l.bf16 %v2253_v60  ;;  %v2265_v32 = vunpack.i.h.bf16 %v2263_v8  ;;  %v2264_v13 = vunpack.i.l.bf16 %v2263_v8 }
 0x146   : > { %v1336_v9 = vsel %vm1329_vm15, %v1327_v29, %v2254_v59  ;;  %v1337_v34 = vsel %vm1329_vm15, %v1328_v3, %v2255_v30 }
 0x147   : > { %v1345_v50 = vsel %vm1338_vm1, %v1336_v9, %v2264_v13  ;;  %v1346_v52 = vsel %vm1338_vm1, %v1337_v34, %v2265_v32 }
 0x148   : > { %v1354_v56 = vsel %vm1347_vm2, %v1345_v50, %v2274_v36  ;;  %v1355_v60 = vsel %vm1347_vm2, %v1346_v52, %v2275_v6 }
 0x14b   : > { %v2268_v31 = vpop.permute.xlu1 %2267  ;;  %v2278_v16 = vpop.permute.xlu0 %2277 }
 0x14c   : > { %v2270_v38 = vunpack.i.h.bf16 %v2268_v31  ;;  %v2269_v23 = vunpack.i.l.bf16 %v2268_v31  ;;  %v2280_v49 = vunpack.i.h.bf16 %v2278_v16  ;;  %v2279_v19 = vunpack.i.l.bf16 %v2278_v16 }
 0x14e   : > { %v1339_v63 = vsel %vm1338_vm1, %v1330_v37, %v2269_v23  ;;  %v1340_v0 = vsel %vm1338_vm1, %v1331_v18, %v2270_v38 }
 0x14f   : > { %v1348_v41 = vsel %vm1347_vm2, %v1339_v63, %v2279_v19  ;;  %v1349_v42 = vsel %vm1347_vm2, %v1340_v0, %v2280_v49 }
 0x150   : > { %v1357_v33 = vsel %vm1356_vm3, %v1348_v41, %v2289_v53  ;;  %v1358_v5 = vsel %vm1356_vm3, %v1349_v42, %v2290_v47 }
 0x153   : > { %v2283_v57 = vpop.permute.xlu1 %2282  ;;  %v2293_v58 = vpop.permute.xlu0 %2292 }
 0x154   : > { %v2285_v35 = vunpack.i.h.bf16 %v2283_v57  ;;  %v2284_v25 = vunpack.i.l.bf16 %v2283_v57  ;;  %v2295_v12 = vunpack.i.h.bf16 %v2293_v58  ;;  %v2294_v11 = vunpack.i.l.bf16 %v2293_v58 }
 0x156   : > { %v1363_v8 = vsel %vm1356_vm3, %v1354_v56, %v2284_v25  ;;  %v1364_v62 = vsel %vm1356_vm3, %v1355_v60, %v2285_v35 }
 0x157   : > { %v1372_v43 = vsel %vm1365_vm4, %v1363_v8, %v2294_v11  ;;  %v1373_v14 = vsel %vm1365_vm4, %v1364_v62, %v2295_v12 }
 0x158   : > { %v1377_v24 = vpack.c.bf16 %v1373_v14, %v1372_v43 }
 0x15a   : > { %2046 = vmatmul.msk.bf16.gmra.mxu3 %vm1393_vm5, %v1377_v24 }
 0x15b   : > { %v2298_v20 = vpop.permute.xlu1 %2297 }
 0x15c   : > { %v2300_v22 = vunpack.i.h.bf16 %v2298_v20  ;;  %v2299_v10 = vunpack.i.l.bf16 %v2298_v20 }
 0x15e   : > { %v1366_v1 = vsel %vm1365_vm4, %v1357_v33, %v2299_v10  ;;  %v1367_v51 = vsel %vm1365_vm4, %v1358_v5, %v2300_v22 }
 0x15f   : > { %v1374_v61 = vpack.c.bf16 %v1367_v51, %v1366_v1 }
 0x161   : > { %2043 = vmatmul.msk.bf16.vlgmr.msra.gmra.mxu0 %vm1393_vm5, %v1374_v61 }
 0x1a5   : > { %v1424_v26 = vpop.f32.mrf.mxu3 }
 0x1a6   : > { %v1442_v2 = vmul.f32 %v3233_v54, %v1424_v26 }
 0x1a8   : > { %v1451_v48 = vadd.f32 %v3235_v27, %v1442_v2 }
 0x1aa   : > { %v1459_v30 = vmax.f32 %v1451_v48, 0.0 }
 0x1ac   : > { %v1485_v13 = vrot.slane %v1459_v30, 7 }
 0x1ad   : > { %v1426_v17 = vpop.f32.mrf.mxu3 }
 0x1ae   : > { %v1443_v41 = vmul.f32 %v3233_v54, %v1426_v17  ;;  %v1509_v6 = vsel %vm1018_vm9, %v1485_v13, 0.0  ;;  %v3270_v57 = vsel %vm1018_vm9, 0.0, %v1485_v13 }
 0x1af   : > { %v1536_v12 = vrot.slane %v1509_v6, 1  ;;  %v1581_v11 = vrot.slane %v1509_v6, 2  ;;  %v1580_v8 = vrot.slane %v3270_v57, 2  ;;  %v1535_v62 = vrot.slane %v3270_v57, 1 }
 0x1b0   : > { %v1452_v36 = vadd.f32 %v3235_v27, %v1443_v41 }
 0x1b1   : > { %v1582_v22 = vsel %vm1102_vm11, %v1580_v8, %v1581_v11  ;;  %v1537_v10 = vsel %vm1053_vm10, %v1535_v62, %v1536_v12 }
 0x1b2   : > { %v1460_v56 = vmax.f32 %v1452_v36, 0.0 }
 0x1b4   : > { %v1486_v24 = vrot.slane %v1460_v56, 7 }
 0x1b5   : > { %v1429_v59 = vpop.f32.mrf.mxu3 }
 0x1b6   : > { %v1444_v60 = vmul.f32 %v3233_v54, %v1429_v59  ;;  %v3288_v39 = vsel %vm1018_vm9, 0.0, %v1486_v24 }
 0x1b8   : > { %v1453_v20 = vadd.f32 %v3235_v27, %v1444_v60 }
 0x1bd   : > { %v1431_v25 = vpop.f32.mrf.mxu3 }
 0x1be   : > { %v1445_v43 = vmul.f32 %v3233_v54, %v1431_v25 }
 0x1c0   : > { %v1454_v61 = vadd.f32 %v3235_v27, %v1445_v43 }
 0x1c2   : > { %v1462_v17 = vmax.f32 %v1454_v61, 0.0 }
 0x1dd   : > { %v1434_v26 = vpop.f32.mrf.mxu3 }
 0x1de   : > { %v1419_v45 = vpop.f32.mrf.mxu0 }
 0x1df   : > { %v1440_v55 = vmul.f32 %v3233_v54, %v1419_v45  ;;  %v1510_v45 = vsel %vm1018_vm9, %v1486_v24, 0.0 }
 0x1e0   : > { %v1584_v2 = vrot.slane %v1510_v45, 2  ;;  %v1539_v48 = vrot.slane %v1510_v45, 1 }
 0x1e1   : > { %v1449_v21 = vadd.f32 %v3235_v27, %v1440_v55  ;;  %v1461_v55 = vmax.f32 %v1453_v20, 0.0 }
 0x1e3   : > { %v1457_v28 = vmax.f32 %v1449_v21, 0.0  ;;  %v1446_v21 = vmul.f32 %v3233_v54, %v1434_v26 }
 0x1e5   : > { %v1483_v44 = vrot.slane %v1457_v28, 7  ;;  %v1583_v28 = vrot.slane %v3288_v39, 2 }
 0x1e6   : > { %v1421_v46 = vpop.f32.mrf.mxu0 }
 0x1e7   : > { %v3242_v15 = vsel %vm1018_vm9, 0.0, %v1483_v44  ;;  %v1507_v31 = vsel %vm1018_vm9, %v1483_v44, 0.0  ;;  %v1441_v16 = vmul.f32 %v3233_v54, %v1421_v46  ;;  %v1487_v44 = vrot.slane %v1461_v55, 7 }
 0x1e8   : > { %v1530_v47 = vrot.slane %v1507_v31, 1  ;;  %v1575_v53 = vrot.slane %v1507_v31, 2  ;;  %v1574_v38 = vrot.slane %v3242_v15, 2  ;;  %v1529_v49 = vrot.slane %v3242_v15, 1 }
 0x1e9   : > { %v1450_v23 = vadd.f32 %v3235_v27, %v1441_v16  ;;  %v2351_v46 = vpack.i.bf16 %v3288_v39, %v3270_v57  ;;  %v1488_v31 = vrot.slane %v1462_v17, 7  ;;  %v1455_v16 = vadd.f32 %v3235_v27, %v1446_v21 }
 0x1ea   : > { %v1576_v19 = vsel %vm1102_vm11, %v1574_v38, %v1575_v53  ;;  %v1531_v63 = vsel %vm1053_vm10, %v1529_v49, %v1530_v47  ;;  %v1538_v47 = vrot.slane %v3288_v39, 1  ;;  %v1585_v53 = vsel %vm1102_vm11, %v1583_v28, %v1584_v2  ;;  %v1436_v49 = vpop.f32.mrf.mxu3 }
 0x1eb   : > { %v1458_v37 = vmax.f32 %v1450_v23, 0.0  ;;  %v2306_v18 = vpack.i.bf16 %v1576_v19, %v3051_v40  ;;  %v2301_v0 = vpack.i.bf16 %v1531_v63, %v3094_v7  ;;  %v3302_v38 = vsel %vm1018_vm9, 0.0, %v1487_v44 }
 0x1ec   : > { %v1511_v23 = vsel %vm1018_vm9, %v1487_v44, 0.0  ;;  %v1463_v30 = vmax.f32 %v1455_v16, 0.0  ;;  %v2361_v59 = vpack.i.bf16 %v1585_v53, %v1582_v22 }
 0x1ed   : > { %v1484_v32 = vrot.slane %v1458_v37, 7  ;;  %2307 = vrot.lane.b32.xlu1 %v2306_v18, %s2532_s16  ;;  %2302 = vrot.lane.b32.xlu2 %v2301_v0, %s2527_s12  ;;  %v1540_v37 = vsel %vm1053_vm10, %v1538_v47, %v1539_v48  ;;  %v1587_v18 = vrot.slane %v1511_v23, 2  ;;  %v1586_v0 = vrot.slane %v3302_v38, 2 }
 0x1ee   : > { %v1542_v41 = vrot.slane %v1511_v23, 1  ;;  %v2446_v47 = vpack.i.bf16 %v3302_v38, %v3288_v39 }
 0x1ef   : > { %v3257_v42 = vsel %vm1018_vm9, 0.0, %v1484_v32  ;;  %v1508_v3 = vsel %vm1018_vm9, %v1484_v32, 0.0  ;;  %v2356_v32 = vpack.i.bf16 %v1540_v37, %v1537_v10 }
 0x1f0   : > { %v1533_v29 = vrot.slane %v1508_v3, 1  ;;  %v1578_v33 = vrot.slane %v1508_v3, 2  ;;  %v2311_v5 = vpack.i.bf16 %v3257_v42, %v3242_v15  ;;  %v1577_v9 = vrot.slane %v3257_v42, 2 }
 0x1f1   : > { %v1532_v34 = vrot.slane %v3257_v42, 1  ;;  %v2316_v14 = vpack.i.bf16 %v3270_v57, %v3257_v42  ;;  %v1489_v3 = vrot.slane %v1463_v30, 7 }
 0x1f2   : > { %2312 = vrot.lane.b32.xlu0 %v2311_v5, %s2529_s14  ;;  %v1579_v50 = vsel %vm1102_vm11, %v1577_v9, %v1578_v33  ;;  %v1512_v5 = vsel %vm1018_vm9, %v1488_v31, 0.0 }
 0x1f3   : > { %v1534_v52 = vsel %vm1053_vm10, %v1532_v34, %v1533_v29  ;;  %v2326_v58 = vpack.i.bf16 %v1579_v50, %v1576_v19  ;;  %v2336_v1 = vpack.i.bf16 %v1582_v22, %v1579_v50  ;;  %v3306_v19 = vsel %vm1018_vm9, 0.0, %v1488_v31 }
 0x1f4   : > { %v2321_v35 = vpack.i.bf16 %v1534_v52, %v1531_v63  ;;  %v2331_v51 = vpack.i.bf16 %v1537_v10, %v1534_v52  ;;  %v1447_v63 = vmul.f32 %v3233_v54, %v1436_v49  ;;  %v2376_v13 = vpack.i.bf16 %v3306_v19, %v3302_v38 }
 0x1f5   : > { %2327 = vrot.lane.b32.xlu2 %v2326_v58, %s2534_s10  ;;  %v1541_v29 = vrot.slane %v3302_v38, 1  ;;  %v1588_v54 = vsel %vm1102_vm11, %v1586_v0, %v1587_v18  ;;  %v3321_v9 = vsel %vm1018_vm9, 0.0, %v1489_v3  ;;  %v1590_v36 = vrot.slane %v1512_v5, 2  ;;  %v2076_v18 = vld [vmem:[%s3532_s3 + $0x8] sm:$0xff]  ;;  %v2075_v0 = vld [vmem:[%s3532_s3] sm:$0xff] }
 0x1f6   : > { %2322 = vrot.lane.b32.xlu1 %v2321_v35, %s2533_s17  ;;  %v1456_v33 = vadd.f32 %v3235_v27, %v1447_v63  ;;  %v2371_v34 = vpack.i.bf16 %v1588_v54, %v1585_v53  ;;  %v1513_v50 = vsel %vm1018_vm9, %v1489_v3, 0.0  ;;  %v1589_v27 = vrot.slane %v3306_v19, 2 }
 0x1f7   : > { %v1543_v6 = vsel %vm1053_vm10, %v1541_v29, %v1542_v41  ;;  %v2391_v35 = vpack.i.bf16 %v3321_v9, %v3306_v19  ;;  %v1545_v25 = vrot.slane %v1512_v5, 1  ;;  %v1593_v12 = vrot.slane %v1513_v50, 2 }
 0x1f8   : > { %v1464_v52 = vmax.f32 %v1456_v33, 0.0  ;;  %v2366_v58 = vpack.i.bf16 %v1543_v6, %v1540_v37  ;;  %v1544_v11 = vrot.slane %v3306_v19, 1  ;;  %v1592_v56 = vrot.slane %v3321_v9, 2  ;;  %v2077_v37 = vld [vmem:[%s3532_s3 + $0x10] sm:$0xff] }
 0x1f9   : > { %v1591_v8 = vsel %vm1102_vm11, %v1589_v27, %v1590_v36  ;;  %v1548_v24 = vrot.slane %v1513_v50, 1  ;;  %v1547_v10 = vrot.slane %v3321_v9, 1 }
 0x1fa   : > { %2317 = vrot.lane.b32.xlu0 %v2316_v14, %s2535_s11  ;;  %v1490_v60 = vrot.slane %v1464_v52, 7  ;;  %v2386_v62 = vpack.i.bf16 %v1591_v8, %v1588_v54  ;;  %v1546_v43 = vsel %vm1053_vm10, %v1544_v11, %v1545_v25  ;;  %v1594_v14 = vsel %vm1102_vm11, %v1592_v56, %v1593_v12 }
 0x1fb   : > { %v1549_v45 = vsel %vm1053_vm10, %v1547_v10, %v1548_v24 }
 0x1fc   : > { %v1506_v20 = vsel %vm1018_vm9, 0.0, %v1490_v60  ;;  %v1514_v22 = vsel %vm1018_vm9, %v1490_v60, 0.0  ;;  %v2396_v55 = vpack.i.bf16 %v1549_v45, %v1546_v43  ;;  %vm1830_vm9 = vcmask 523264  }
 0x1fd   : > { %2337 = vrot.lane.b32.xlu2 %v2336_v1, %s2536_s13  ;;  %v1673_v61 = vrot.slane %v1514_v22, 2  ;;  %v1672_v26 = vrot.slane %v1506_v20, 2  ;;  %v1646_v2 = vrot.slane %v1514_v22, 1  ;;  %v1645_v28 = vrot.slane %v1506_v20, 1 }
 0x1fe   : > { %2332 = vrot.lane.b32.xlu1 %v2331_v51, %s2537_s15  ;;  %v2421_v16 = vpack.i.bf16 %v3023_v4, %v1506_v20 }
 0x1ff   : > { %v1674_v17 = vsel %vm1102_vm11, %v1672_v26, %v1673_v61  ;;  %v1647_v44 = vsel %vm1053_vm10, %v1645_v28, %v1646_v2  ;;  %vm1870_vm10 = vcmask 588800  }
 0x200   : > { %v2431_v21 = vpack.i.bf16 %v1674_v17, %v1594_v14  ;;  %v2436_v48 = vpack.i.bf16 %v3094_v7, %v1647_v44  ;;  %v2426_v31 = vpack.i.bf16 %v1647_v44, %v1549_v45  ;;  %v2441_v53 = vpack.i.bf16 %v3051_v40, %v1674_v17  ;;  %v1473_v7 = vld [vmem:[%s3532_s3 + $0x20] sm:$0xf]  ;;  %v2078_v40 = vld [vmem:[%s3532_s3 + $0x18] sm:$0xff] }
 0x201   : > { %v1860_v23 = vunpack.c.l.b16 %v1473_v7 }
 0x202   : > { %2342 = vrot.lane.b32.xlu0 %v2331_v51, %s2527_s12  ;;  %v2411_v51 = vpack.i.bf16 %v1594_v14, %v1591_v8 }
 0x203   : > { %v1865_v49 = vpack.c.b16 %v1860_v23, %v1860_v23 }
 0x205   : > { %2347 = vrot.lane.b32.xlu2 %v2336_v1, %s2532_s16  ;;  %v2381_v1 = vpack.i.bf16 %v1546_v43, %v1543_v6  ;;  %v1885_v30 = vsel %vm1883_vm0, %v1865_v49, 0 }
 0x206   : > { %2352 = vrot.lane.b32.xlu1 %v2351_v46, %s2529_s14  ;;  %v2416_v46 = vpack.i.bf16 %v1506_v20, %v3321_v9  ;;  %1890 = vmatpush.bf16.msra.mxu1 %v1885_v30 }
 0x207   : > { %2083 = vmatpush.bf16.msra.mxu2 %v1885_v30 }
 0x20a   : > { %2362 = vrot.lane.b32.xlu0 %v2361_v59, %s2534_s10  ;;  %1891 = vmatpush.bf16.msra.mxu1 %v2078_v40 }
 0x20b   : > { %2084 = vmatpush.bf16.msra.mxu2 %v2078_v40 }
 0x20d   : > { %2357 = vrot.lane.b32.xlu2 %v2356_v32, %s2533_s17 }
 0x20e   : > { %2377 = vrot.lane.b32.xlu1 %v2376_v13, %s2529_s14  ;;  %1892 = vmatpush.bf16.msra.mxu1 %v2077_v37 }
 0x20f   : > { %2085 = vmatpush.bf16.msra.mxu2 %v2077_v37 }
 0x212   : > { %2372 = vrot.lane.b32.xlu0 %v2371_v34, %s2532_s16  ;;  %1893 = vmatpush.bf16.msra.mxu1 %v2076_v18 }
 0x213   : > { %2086 = vmatpush.bf16.msra.mxu2 %v2076_v18 }
 0x215   : > { %2367 = vrot.lane.b32.xlu2 %v2366_v58, %s2527_s12 }
 0x216   : > { %2392 = vrot.lane.b32.xlu1 %v2391_v35, %s2535_s11  ;;  %1894 = vmatpush.bf16.msra.mxu1 %v2075_v0 }
 0x217   : > { %2087 = vmatpush.bf16.msra.mxu2 %v2075_v0 }
 0x21a   : > { %2387 = vrot.lane.b32.xlu0 %v2386_v62, %s2534_s10 }
 0x21d   : > { %2382 = vrot.lane.b32.xlu2 %v2381_v1, %s2533_s17 }
 0x21e   : > { %2412 = vrot.lane.b32.xlu1 %v2411_v51, %s2532_s16 }
 0x222   : > { %2397 = vrot.lane.b32.xlu0 %v2396_v55, %s2537_s15 }
 0x225   : > { %2402 = vrot.lane.b32.xlu2 %v2411_v51, %s2536_s13 }
 0x226   : > { %2432 = vrot.lane.b32.xlu1 %v2431_v21, %s2534_s10 }
 0x22a   : > { %2407 = vrot.lane.b32.xlu0 %v2396_v55, %s2527_s12 }
 0x22d   : > { %2417 = vrot.lane.b32.xlu2 %v2416_v46, %s2529_s14  ;;  %s2079_s14 = sshll.u32 %s2590_s22, 6 }
 0x22e   : > { %2437 = vrot.lane.b32.xlu1 %v2436_v48, %s2537_s15  ;;  %s1962_s23 = scalar_lea.hbm %s3534_s5, %s2079_s14 }
 0x22f   : > { %s1965_s26 = sshll.u32 %s1962_s23, 4  ;;  %s1966_s26 = int_to_ptr.hbm [resolvable:$true] %s1965_s26 }
 0x230   : > { %s2475_s30 = sshra.s32 %s1966_s26, 4  ;;  %s2476_s30 = int_to_ptr.hbm [resolvable:$true] %s2475_s30 }
 0x231   : > { %s2477_s6 = scalar_lea.hbm %s2476_s30, 64  ;;  %p2482_p0 = scmp.lt.s32.totalorder %s2476_s30, %s3534_s5 }
 0x232   : > { %2427 = vrot.lane.b32.xlu0 %v2426_v31, %s2533_s17  ;;  %p2478_p11 = scmp.ne.s32.totalorder %s2476_s30, %s2477_s6  ;;  %p2483_p1 = scmp.lt.s32.totalorder %s2481_s9, %s2477_s6 }
 0x234   : > { %p2479_p12 = pnand %p2478_p11, %p2607_p5  ;;  %p2484_p2 = por %p2483_p1, %p2482_p0 }
 0x235   : > { %2422 = vrot.lane.b32.xlu2 %v2421_v16, %s2535_s11 }
 0x236   : > { %2447 = vrot.lane.b32.xlu1 %v2446_v47, %s2535_s11  ;;  %s215_s11 = sand.u32 1, %s2515_s19   ;;  %p2480_p13 = pneg %p2479_p12 }
 0x237   : > { %s1951_s22 = scalar_lea.sflag [#allocation3], %s215_s11 }
 0x238   : > { %p2485_p3 = pnand %p2484_p2, %p2480_p13 }
 0x23a   : > { %2442 = vrot.lane.b32.xlu0 %v2441_v53, %s2536_s13 }
 0x23d   : > { %2452 = vrot.lane.b32.xlu2 %v2366_v58, %s2537_s15 }
 0x242   : > { %2457 = vrot.lane.b32.xlu0 %v2371_v34, %s2536_s13  ;;  %s2032_s13 = sshll.u32 %s215_s11, 6 }
 0x243   : > { %s3476_s15 = scalar_lea.vmem [#allocation2], %s2032_s13 }
 0x244   : > { %s1963_s25 = sshll.u32 %s3476_s15, 4  ;;  %s1964_s25 = int_to_ptr.vmem [resolvable:$true] %s1963_s25 }
 0x247   : > { %v2303_v59 = vpop.permute.xlu2 %2302 }
 0x248   : > { %v2305_v29 = vunpack.i.h.bf16 %v2303_v59  ;;  %v2304_v33 = vunpack.i.l.bf16 %v2303_v59 }
 0x24a   : > { %v1772_v27 = vsel %vm1311_vm13, %v3242_v15, %v2305_v29  ;;  %v1771_v58 = vsel %vm1311_vm13, %v3023_v4, %v2304_v33 }
 0x24f   : > { %v2328_v63 = vpop.permute.xlu2 %2327 }
 0x250   : > { %v2330_v14 = vunpack.i.h.bf16 %v2328_v63  ;;  %v2329_v4 = vunpack.i.l.bf16 %v2328_v63 }
 0x257   : > { %v2338_v32 = vpop.permute.xlu2 %2337 }
 0x258   : > { %v2340_v51 = vunpack.i.h.bf16 %v2338_v32  ;;  %v2339_v61 = vunpack.i.l.bf16 %v2338_v32 }
 0x25f   : > { %v2308_v13 = vpop.permute.xlu1 %2307  ;;  %v3378_v41 = vpop.permute.xlu2 %2347 }
 0x260   : > { %v2310_v54 = vunpack.i.h.bf16 %v2308_v13  ;;  %v2309_v5 = vunpack.i.l.bf16 %v2308_v13 }
 0x262   : > { %v1779_v25 = vsel %vm1329_vm15, %v1771_v58, %v2309_v5  ;;  %v1780_v12 = vsel %vm1329_vm15, %v1772_v27, %v2310_v54 }
 0x264   : > { %v2313_v3 = vpop.permute.xlu0 %2312 }
 0x265   : > { %v2315_v6 = vunpack.i.h.bf16 %v2313_v3  ;;  %v2314_v36 = vunpack.i.l.bf16 %v2313_v3 }
 0x267   : > { %v3384_v35 = vpop.permute.xlu2 %2357  ;;  %v1788_v11 = vsel %vm1347_vm2, %v1780_v12, %v2315_v6  ;;  %v1787_v56 = vsel %vm1347_vm2, %v1779_v25, %v2314_v36 }
 0x268   : > { %v2323_v34 = vpop.permute.xlu1 %2322 }
 0x269   : > { %v2325_v50 = vunpack.i.h.bf16 %v2323_v34  ;;  %v2324_v52 = vunpack.i.l.bf16 %v2323_v34 }
 0x26b   : > { %v1796_v8 = vsel %vm1365_vm4, %v1788_v11, %v2325_v50  ;;  %v1795_v62 = vsel %vm1365_vm4, %v1787_v56, %v2324_v52 }
 0x26c   : > { %v2318_v60 = vpop.permute.xlu0 %2317  ;;  %v1804_v20 = vsel %vm1803_vm6, %v1795_v62, %v2329_v4  ;;  %v1805_v22 = vsel %vm1803_vm6, %v1796_v8, %v2330_v14 }
 0x26d   : > { %v2320_v15 = vunpack.i.h.bf16 %v2318_v60  ;;  %v2319_v43 = vunpack.i.l.bf16 %v2318_v60 }
 0x26f   : > { %v1813_v26 = vsel %vm1812_vm7, %v1804_v20, %v2319_v43  ;;  %v1814_v45 = vsel %vm1812_vm7, %v1805_v22, %v2320_v15  ;;  %v2368_v28 = vpop.permute.xlu2 %2367 }
 0x270   : > { %v2333_v24 = vpop.permute.xlu1 %2332  ;;  %v2370_v7 = vunpack.i.h.bf16 %v2368_v28  ;;  %v2369_v23 = vunpack.i.l.bf16 %v2368_v28 }
 0x271   : > { %v2335_v10 = vunpack.i.h.bf16 %v2333_v24  ;;  %v2334_v1 = vunpack.i.l.bf16 %v2333_v24 }
 0x272   : > { %v1776_v37 = vsel %vm1311_vm13, %v3302_v38, %v2370_v7  ;;  %v1775_v18 = vsel %vm1311_vm13, %v3288_v39, %v2369_v23  ;;  %v2359_v23 = vunpack.i.l.bf16 %v3384_v35 }
 0x273   : > { %v1822_v55 = vsel %vm1821_vm8, %v1813_v26, %v2334_v1  ;;  %v1823_v17 = vsel %vm1821_vm8, %v1814_v45, %v2335_v10 }
 0x274   : > { %v1831_v21 = vsel %vm1830_vm9, %v1822_v55, %v2339_v61  ;;  %v1832_v2 = vsel %vm1830_vm9, %v1823_v17, %v2340_v51  ;;  %v2343_v44 = vpop.permute.xlu0 %2342  ;;  %v2350_v55 = vunpack.i.h.bf16 %v3378_v41  ;;  %v2349_v17 = vunpack.i.l.bf16 %v3378_v41 }
 0x275   : > { %v1839_v46 = vpack.c.bf16 %v1832_v2, %v1831_v21  ;;  %v2345_v24 = vunpack.i.h.bf16 %v2343_v44  ;;  %v2344_v20 = vunpack.i.l.bf16 %v2343_v44  ;;  %v2360_v41 = vunpack.i.h.bf16 %v3384_v35 }
 0x277   : > { %2063 = vmatmul.msk.bf16.vlgmr.msra.gmra.mxu1 %vm1870_vm10, %v1839_v46  ;;  %v2383_v16 = vpop.permute.xlu2 %2382  ;;  %v1774_v51 = vsel %vm1311_vm13, %v3270_v57, %v2345_v24  ;;  %v1773_v61 = vsel %vm1311_vm13, %v3257_v42, %v2344_v20 }
 0x278   : > { %v3401_v48 = vpop.permute.xlu1 %2352  ;;  %v2385_v6 = vunpack.i.h.bf16 %v2383_v16  ;;  %v2384_v36 = vunpack.i.l.bf16 %v2383_v16  ;;  %v1781_v46 = vsel %vm1329_vm15, %v1773_v61, %v2349_v17  ;;  %v1782_v57 = vsel %vm1329_vm15, %v1774_v51, %v2350_v55 }
 0x279   : > { %v2355_v28 = vunpack.i.h.bf16 %v3401_v48  ;;  %v2354_v44 = vunpack.i.l.bf16 %v3401_v48 }
 0x27b   : > { %v1789_v48 = vsel %vm1347_vm2, %v1781_v46, %v2354_v44 }
 0x27c   : > { %v3403_v31 = vpop.permute.xlu0 %2362 }
 0x27f   : > { %v2403_v30 = vpop.permute.xlu2 %2402 }
 0x280   : > { %v2378_v47 = vpop.permute.xlu1 %2377  ;;  %v2405_v62 = vunpack.i.h.bf16 %v2403_v30  ;;  %v2404_v15 = vunpack.i.l.bf16 %v2403_v30  ;;  %v2365_v30 = vunpack.i.h.bf16 %v3403_v31 }
 0x281   : > { %v2380_v13 = vunpack.i.h.bf16 %v2378_v47  ;;  %v2379_v3 = vunpack.i.l.bf16 %v2378_v47 }
 0x284   : > { %v2373_v53 = vpop.permute.xlu0 %2372 }
 0x285   : > { %v2375_v40 = vunpack.i.h.bf16 %v2373_v53  ;;  %v2374_v59 = vunpack.i.l.bf16 %v2373_v53 }
 0x287   : > { %v1784_v63 = vsel %vm1329_vm15, %v1776_v37, %v2375_v40  ;;  %v1783_v0 = vsel %vm1329_vm15, %v1775_v18, %v2374_v59  ;;  %v2418_v38 = vpop.permute.xlu2 %2417  ;;  %v2364_v40 = vunpack.i.l.bf16 %v3403_v31 }
 0x288   : > { %v2393_v49 = vpop.permute.xlu1 %2392  ;;  %v1791_v29 = vsel %vm1347_vm2, %v1783_v0, %v2379_v3  ;;  %v1792_v33 = vsel %vm1347_vm2, %v1784_v63, %v2380_v13  ;;  %v2420_v37 = vunpack.i.h.bf16 %v2418_v38  ;;  %v1797_v63 = vsel %vm1365_vm4, %v1789_v48, %v2359_v23 }
 0x289   : > { %v1799_v50 = vsel %vm1365_vm4, %v1791_v29, %v2384_v36  ;;  %v1800_v39 = vsel %vm1365_vm4, %v1792_v33, %v2385_v6  ;;  %v2395_v58 = vunpack.i.h.bf16 %v2393_v49  ;;  %v2394_v25 = vunpack.i.l.bf16 %v2393_v49 }
 0x28a   : > { %v1790_v49 = vsel %vm1347_vm2, %v1782_v57, %v2355_v28  ;;  %v1474_v28 = vld [vmem:[%s3533_s4] sm:$0x3] }
 0x28b   : > { %v1798_v0 = vsel %vm1365_vm4, %v1790_v49, %v2360_v41  ;;  %v1916_v44 = vperm.slane %v1474_v28, 0  ;;  %v1925_v46 = vperm.slane %v1474_v28, 1 }
 0x28c   : > { %v2388_v32 = vpop.permute.xlu0 %2387 }
 0x28d   : > { %v2390_v54 = vunpack.i.h.bf16 %v2388_v32  ;;  %v2389_v5 = vunpack.i.l.bf16 %v2388_v32 }
 0x28f   : > { %v1808_v52 = vsel %vm1803_vm6, %v1799_v50, %v2389_v5  ;;  %v1809_v27 = vsel %vm1803_vm6, %v1800_v39, %v2390_v54  ;;  %v2423_v26 = vpop.permute.xlu2 %2422  ;;  %v1806_v54 = vsel %vm1803_vm6, %v1797_v63, %v2364_v40  ;;  %v1807_v5 = vsel %vm1803_vm6, %v1798_v0, %v2365_v30 }
 0x290   : > { %v2413_v34 = vpop.permute.xlu1 %2412  ;;  %v1817_v60 = vsel %vm1812_vm7, %v1808_v52, %v2394_v25  ;;  %v1818_v8 = vsel %vm1812_vm7, %v1809_v27, %v2395_v58  ;;  %v2425_v27 = vunpack.i.h.bf16 %v2423_v26  ;;  %v2424_v58 = vunpack.i.l.bf16 %v2423_v26 }
 0x291   : > { %v2415_v53 = vunpack.i.h.bf16 %v2413_v34  ;;  %v2414_v7 = vunpack.i.l.bf16 %v2413_v34 }
 0x294   : > { %v2398_v12 = vpop.permute.xlu0 %2397 }
 0x295   : > { %v2400_v11 = vunpack.i.h.bf16 %v2398_v12  ;;  %v2399_v56 = vunpack.i.l.bf16 %v2398_v12 }
 0x297   : > { %v1826_v43 = vsel %vm1821_vm8, %v1817_v60, %v2399_v56  ;;  %v1827_v14 = vsel %vm1821_vm8, %v1818_v8, %v2400_v11  ;;  %v2453_v13 = vpop.permute.xlu2 %2452 }
 0x298   : > { %v2433_v4 = vpop.permute.xlu1 %2432  ;;  %v1835_v22 = vsel %vm1830_vm9, %v1826_v43, %v2404_v15  ;;  %v1836_v10 = vsel %vm1830_vm9, %v1827_v14, %v2405_v62  ;;  %v2455_v25 = vunpack.i.h.bf16 %v2453_v13  ;;  %v2454_v12 = vunpack.i.l.bf16 %v2453_v13 }
 0x299   : > { %v1841_v1 = vpack.c.bf16 %v1836_v10, %v1835_v22  ;;  %v2435_v3 = vunpack.i.h.bf16 %v2433_v4  ;;  %v2434_v29 = vunpack.i.l.bf16 %v2433_v4 }
 0x29b   : > { %2065 = vmatmul.msk.bf16.vlgmr.msra.gmra.mxu2 %vm1870_vm10, %v1841_v1 }
 0x29c   : > { %v2408_v45 = vpop.permute.xlu0 %2407 }
 0x29d   : > { %v2410_v21 = vunpack.i.h.bf16 %v2408_v45  ;;  %v2409_v2 = vunpack.i.l.bf16 %v2408_v45 }
 0x29f   : > { %v1778_v42 = vsel %vm1311_vm13, %v3321_v9, %v2410_v21  ;;  %v1777_v47 = vsel %vm1311_vm13, %v3306_v19, %v2409_v2  ;;  %v2419_v19 = vunpack.i.l.bf16 %v2418_v38 }
 0x2a0   : > { %v2438_v16 = vpop.permute.xlu1 %2437  ;;  %v1785_v59 = vsel %vm1329_vm15, %v1777_v47, %v2414_v7  ;;  %v1786_v9 = vsel %vm1329_vm15, %v1778_v42, %v2415_v53 }
 0x2a1   : > { %v1793_v33 = vsel %vm1347_vm2, %v1785_v59, %v2419_v19  ;;  %v1794_v31 = vsel %vm1347_vm2, %v1786_v9, %v2420_v37  ;;  %v2440_v43 = vunpack.i.h.bf16 %v2438_v16  ;;  %v2439_v14 = vunpack.i.l.bf16 %v2438_v16 }
 0x2a4   : > { %v2428_v18 = vpop.permute.xlu0 %2427 }
 0x2a5   : > { %v2430_v35 = vunpack.i.h.bf16 %v2428_v18  ;;  %v2429_v32 = vunpack.i.l.bf16 %v2428_v18 }
 0x2a7   : > { %v1801_v34 = vsel %vm1365_vm4, %v1793_v33, %v2429_v32  ;;  %v1802_v6 = vsel %vm1365_vm4, %v1794_v31, %v2430_v35 }
 0x2a8   : > { %v2448_v36 = vpop.permute.xlu1 %2447  ;;  %v1810_v38 = vsel %vm1803_vm6, %v1801_v34, %v2434_v29  ;;  %v1811_v50 = vsel %vm1803_vm6, %v1802_v6, %v2435_v3 }
 0x2a9   : > { %v2450_v39 = vunpack.i.h.bf16 %v2448_v36  ;;  %v2449_v52 = vunpack.i.l.bf16 %v2448_v36  ;;  %v1819_v60 = vsel %vm1812_vm7, %v1810_v38, %v2424_v58  ;;  %v1820_v8 = vsel %vm1812_vm7, %v1811_v50, %v2425_v27 }
 0x2aa   : > { %v1828_v22 = vsel %vm1821_vm8, %v1819_v60, %v2439_v14  ;;  %v1829_v10 = vsel %vm1821_vm8, %v1820_v8, %v2440_v43 }
 0x2ab   : > { %v1815_v11 = vsel %vm1812_vm7, %v1806_v54, %v2449_v52  ;;  %v1816_v56 = vsel %vm1812_vm7, %v1807_v5, %v2450_v39 }
 0x2ac   : > { %v1824_v62 = vsel %vm1821_vm8, %v1815_v11, %v2454_v12  ;;  %v1825_v15 = vsel %vm1821_vm8, %v1816_v56, %v2455_v25  ;;  %v2443_v4 = vpop.permute.xlu0 %2442 }
 0x2ad   : > { %v2445_v24 = vunpack.i.h.bf16 %v2443_v4  ;;  %v2444_v20 = vunpack.i.l.bf16 %v2443_v4 }
 0x2af   : > { %v1837_v1 = vsel %vm1830_vm9, %v1828_v22, %v2444_v20  ;;  %v1838_v51 = vsel %vm1830_vm9, %v1829_v10, %v2445_v24 }
 0x2b0   : > { %v1842_v61 = vpack.c.bf16 %v1838_v51, %v1837_v1 }
 0x2b2   : > { %2066 = vmatmul.msk.bf16.gmra.mxu2 %vm1870_vm10, %v1842_v61 }
 0x2b4   : > { %v2458_v26 = vpop.permute.xlu0 %2457 }
 0x2b5   : > { %v2460_v45 = vunpack.i.h.bf16 %v2458_v26  ;;  %v2459_v55 = vunpack.i.l.bf16 %v2458_v26 }
 0x2b7   : > { %v1833_v17 = vsel %vm1830_vm9, %v1824_v62, %v2459_v55  ;;  %v1834_v21 = vsel %vm1830_vm9, %v1825_v15, %v2460_v45 }
 0x2b8   : > { %v1840_v2 = vpack.c.bf16 %v1834_v21, %v1833_v17 }
 0x2ba   : > { %2064 = vmatmul.msk.bf16.gmra.mxu1 %vm1870_vm10, %v1840_v2 }
 0x2f4   : > { %v1896_v57 = vpop.f32.mrf.mxu1 }
 0x2f5   : > { %v1917_v16 = vmul.f32 %v1916_v44, %v1896_v57 }
 0x2f7   : > { %v1926_v42 = vadd.f32 %v1925_v46, %v1917_v16 }
 0x2f9   : > { %v1934_v47 = vmax.f32 %v1926_v42, 0.0 }
 0x2fb   : > { %1942 = vst.msk [vmem:[%s3476_s15] sm:$0xff] %vm1311_vm13, %v1934_v47 }
 0x2fc   : > { %v1898_v53 = vpop.f32.mrf.mxu1 }
 0x2fd   : > { %v1918_v7 = vmul.f32 %v1916_v44, %v1898_v53 }
 0x2ff   : > { %v1927_v41 = vadd.f32 %v1925_v46, %v1918_v7 }
 0x301   : > { %v1935_v23 = vmax.f32 %v1927_v41, 0.0 }
 0x303   : > { %1943 = vst.msk [vmem:[%s3476_s15 + $0x8] sm:$0xff] %vm1311_vm13, %v1935_v23 }
 0x31e   : > { %v1906_v49 = vpop.f32.mrf.mxu2 }
 0x31f   : > { %v1921_v48 = vmul.f32 %v1916_v44, %v1906_v49 }
 0x321   : > { %v1930_v30 = vadd.f32 %v1925_v46, %v1921_v48 }
 0x323   : > { %v1938_v40 = vmax.f32 %v1930_v30, 0.0 }
 0x325   : > { %1946 = vst.msk [vmem:[%s3476_s15 + $0x20] sm:$0xff] %vm1311_vm13, %v1938_v40 }
 0x326   : > { %v1908_v59 = vpop.f32.mrf.mxu2 }
 0x327   : > { %v1922_v9 = vmul.f32 %v1916_v44, %v1908_v59 }
 0x329   : > { %v1931_v37 = vadd.f32 %v1925_v46, %v1922_v9 }
 0x32b   : > { %v1939_v19 = vmax.f32 %v1931_v37, 0.0 }
 0x32d   : > { %1947 = vst.msk [vmem:[%s3476_s15 + $0x28] sm:$0xff] %vm1311_vm13, %v1939_v19 }
 0x335   : > { %v1911_v18 = vpop.f32.mrf.mxu2 }
 0x336   : > { %v1923_v63 = vmul.f32 %v1916_v44, %v1911_v18 }
 0x337   : > { %v1901_v0 = vpop.f32.mrf.mxu1 }
 0x338   : > { %v1932_v35 = vadd.f32 %v1925_v46, %v1923_v63  ;;  %v1919_v32 = vmul.f32 %v1916_v44, %v1901_v0 }
 0x33a   : > { %v1940_v13 = vmax.f32 %v1932_v35, 0.0  ;;  %v1928_v3 = vadd.f32 %v1925_v46, %v1919_v32 }
 0x33c   : > { %1948 = vst.msk [vmem:[%s3476_s15 + $0x30] sm:$0xff] %vm1311_vm13, %v1940_v13  ;;  %v1936_v29 = vmax.f32 %v1928_v3, 0.0 }
 0x33d   : > { %v1913_v33 = vpop.f32.mrf.mxu2 }
 0x33e   : > { %1944 = vst.msk [vmem:[%s3476_s15 + $0x10] sm:$0xff] %vm1311_vm13, %v1936_v29  ;;  %v1924_v31 = vmul.f32 %v1916_v44, %v1913_v33 }
 0x33f   : > { %v1903_v54 = vpop.f32.mrf.mxu1 }
 0x340   : > { %v1933_v5 = vadd.f32 %v1925_v46, %v1924_v31  ;;  %v1920_v34 = vmul.f32 %v1916_v44, %v1903_v54 }
 0x342   : > { %v1941_v6 = vmax.f32 %v1933_v5, 0.0  ;;  %v1929_v36 = vadd.f32 %v1925_v46, %v1920_v34 }
 0x344   : > { %1949 = vst.msk [vmem:[%s3476_s15 + $0x38] sm:$0xff] %vm1311_vm13, %v1941_v6  ;;  %v1937_v38 = vmax.f32 %v1929_v36, 0.0 }
 0x346   : > { %1945 = vst.msk [vmem:[%s3476_s15 + $0x18] sm:$0xff] %vm1311_vm13, %v1937_v38 }
 0x347   : > { %2488 = shalt.err (!%p2485_p3)
}
 0x348   : > { %s2538_s11 = smov 128  }
 0x349   : > { %2088 = dma.vmem_to_hbm [thread:$0]  (%p2607_p5), %s1964_s25, 1024, %s1966_s26, %s1951_s22, %s2538_s11, %s2538_s11, %s2527_s12  }
 0x34a PF: > { %p2094_p4 = scmp.ge.s32.totalorder %s2523_s21, 2  ;;  %s1980_s15 = sand.u32 1, %s2511_s18  }
 0x34b   : > { %s1981_s14 = scalar_lea.sflag [#allocation3], %s1980_s15 }
 0x34c   : > { %p2091_p7 = pnand %p2094_p4, %p2611_p6 }
 0x34e   : > { %p2092_p8 = pneg %p2091_p7 }
 0x350   : > { %2506 = dma.done.wait (%p2092_p8), %s1981_s14, 1024  }
 0x351   : > { %2508 = vsyncadd (%p2092_p8), %s1981_s14, 4294966272  ;;  %p15_p9 = scmp.ge.s32.totalorder %s2594_s24, 4   ;;  %s3537_s18 = smov %s2515_s19 }
 0x352   : > { %s3538_s19 = smov %s2519_s20  ;;  %s3539_s20 = smov %s2605_s27 }
 0x353   : > { %s3540_s21 = smov %s2594_s24  ;;  %17 = sbr.rel (!%p15_p9) target bundleno = 3 (0x3), region = 75 }
 0x358   :  { %1987 = vsyncpa [#allocation3], 1 }
 0x359   :  { %1989 = vsyncpa [#allocation3 + $0x1], 1 }

</bundles_post_ra>
